<compile_context>
chip_gen: v7x
topology: tpu7x:2x2x1
jax: 0.10.0
libtpu: 0.0.40
codegen_flags: <defaults>
</compile_context>

<pallas_src>
import math

import jax
import jax.numpy as jnp
from jax import lax
from jax.experimental import pallas as pl
from jax.experimental.pallas import tpu as pltpu


def _gelu_exact(x):
    # nn.GELU() default = exact erf formulation
    return 0.5 * x * (1.0 + lax.erf(x * (1.0 / math.sqrt(2.0))))


def ffn_lora_kernel(x_ref, w1t_ref, b1_ref, w2t_ref, b2_ref,
                    odd1t_ref, m1_ref, omega_ref, e2_ref, out_ref):
    """One grid step = one (batch, seq-tile).

    x_ref    : (1, TS, D)
    w1t_ref  : (D, H)        b1_ref : (1, H)        (batch-shared, VMEM-resident)
    w2t_ref  : (H, Do)       b2_ref : (1, Do)
    odd1t_ref: (1, D, Rp)    m1_ref : (1, Rp, H)    (rank-R LoRA factors, zero-padded)
    omega_ref: (1, H, R*R)   e2_ref : (1, R*R, Do)  (rank-R^2 LoRA factors)
    out_ref  : (1, TS, Do)
    """
    x = x_ref[0]                                                            # (TS, D)

    # ---- linear1: dense (batch-shared weight) + low-rank LoRA correction ----
    h = jnp.dot(x, w1t_ref[...], preferred_element_type=jnp.float32)        # (TS, H)
    alpha = jnp.dot(x, odd1t_ref[0], preferred_element_type=jnp.float32)    # (TS, Rp)
    h = h + jnp.dot(alpha, m1_ref[0], preferred_element_type=jnp.float32)   # + LoRA
    h = _gelu_exact(h + b1_ref[...])

    # ---- linear2: dense (batch-shared weight) + low-rank LoRA correction ----
    y = jnp.dot(h, w2t_ref[...], preferred_element_type=jnp.float32)        # (TS, Do)
    beta = jnp.dot(h, omega_ref[0], preferred_element_type=jnp.float32)     # (TS, R*R)
    y = y + jnp.dot(beta, e2_ref[0], preferred_element_type=jnp.float32)    # + LoRA
    y = y + b2_ref[...]
    out_ref[0] = y.astype(out_ref.dtype)


def position_wise_ffn_lora(x, w1, b1, w2, b2, scale, *, lora_dim, layer_sequence):
    B, S, D = x.shape
    H = w1.shape[0]                      # num_hiddens
    Do = w2.shape[0]                     # num_outputs
    R = lora_dim // 4                    # rank blocks per linear (=4 for lora_dim=16)
    assert lora_dim % 4 == 0 and D % R == 0
    assert H == R * D and Do == D, \
        "module requires num_hiddens == (lora_dim//4)*num_input and num_outputs == num_input"

    f32 = jnp.float32
    scale = jnp.asarray(scale, f32)

    # --- glue: per-batch low-rank LoRA factors (tiny; replaces matrix1/matrix2) ---
    idx = lora_dim * layer_sequence + 1
    lora = lax.slice_in_dim(x, idx, idx + lora_dim, axis=1).astype(f32)      # (B, 2R*2, D)... (B, lora_dim, D)
    even = lora[:, ::2, :]                                                   # (B, 2R, D)
    odd = lora[:, 1::2, :]                                                   # (B, 2R, D)
    even1, odd1 = even[:, :R], odd[:, :R]                                    # linear1 factors (B, R, D)
    even2, odd2 = even[:, R:], odd[:, R:]                                    # linear2 factors (B, R, D)

    eyeR = jnp.eye(R, dtype=f32)
    Rp = max(8, ((R + 7) // 8) * 8)      # pad rank to a sublane multiple
    R2 = R * R

    # linear1 correction:  alpha = x @ odd1t  (rank R);  corr1 = alpha @ m1
    #   odd1t[b, j, k]    = odd1[b, k, j]
    #   m1[b, k, k*D + i] = scale * even1[b, k, i]      (block-diagonal placement)
    odd1t = jnp.swapaxes(odd1, 1, 2)                                         # (B, D, R)
    odd1t = jnp.pad(odd1t, ((0, 0), (0, 0), (0, Rp - R)))                    # (B, D, Rp)
    m1 = (eyeR[None, :, :, None] * (scale * even1)[:, None, :, :]).reshape(B, R, H)
    m1 = jnp.pad(m1, ((0, 0), (0, Rp - R), (0, 0)))                          # (B, Rp, H)

    # linear2 correction:  beta = h @ omega  (rank R*R);  corr2 = beta @ e2
    #   omega[b, u*D + j, u*R + g]       = odd2[b, g, j]
    #   e2[b, u*R + g, g*(D//R) + o']    = scale * even2[b, g, R*o' + u]
    odd2t = jnp.swapaxes(odd2, 1, 2)                                         # (B, D, R)
    omega = (eyeR[None, :, None, :, None]
             * odd2t[:, None, :, None, :]).reshape(B, H, R2)                 # (B, H, R^2)
    even2_rs = even2.reshape(B, R, D // R, R)                                # [b, g, o', u]
    even2_rs = jnp.transpose(even2_rs, (0, 3, 1, 2))                         # [b, u, g, o']
    e2 = (eyeR[None, None, :, :, None]
          * (scale * even2_rs)[:, :, :, None, :]).reshape(B, R2, D)          # (B, R^2, Do)

    # pre-transposed, batch-shared dense weights (transposed once, outside the grid)
    w1t = jnp.swapaxes(w1, 0, 1).astype(f32)      # (D, H)
    w2t = jnp.swapaxes(w2, 0, 1).astype(f32)      # (H, Do)
    b1_2d = b1.reshape(1, H).astype(f32)
    b2_2d = b2.reshape(1, Do).astype(f32)
    x_f32 = x.astype(f32)

    # Seq tiling: everything at these sizes fits VMEM comfortably. For production
    # shapes (large D/H) also tile H/D with a reduction grid axis + f32 accumulator.
    TS = S if S <= 256 else 256
    assert S % TS == 0

    return pl.pallas_call(
        ffn_lora_kernel,
        out_shape=jax.ShapeDtypeStruct((B, S, Do), x.dtype),
        grid=(B, S // TS),
        in_specs=[
            pl.BlockSpec((1, TS, D), lambda b, s: (b, s, 0)),     # x tile
            pl.BlockSpec((D, H), lambda b, s: (0, 0)),            # W1^T (batch-shared)
            pl.BlockSpec((1, H), lambda b, s: (0, 0)),            # b1
            pl.BlockSpec((H, Do), lambda b, s: (0, 0)),           # W2^T (batch-shared)
            pl.BlockSpec((1, Do), lambda b, s: (0, 0)),           # b2
            pl.BlockSpec((1, D, Rp), lambda b, s: (b, 0, 0)),     # odd1t  (per batch)
            pl.BlockSpec((1, Rp, H), lambda b, s: (b, 0, 0)),     # m1     (per batch)
            pl.BlockSpec((1, H, R2), lambda b, s: (b, 0, 0)),     # omega  (per batch)
            pl.BlockSpec((1, R2, Do), lambda b, s: (b, 0, 0)),    # e2     (per batch)
        ],
        out_specs=pl.BlockSpec((1, TS, Do), lambda b, s: (b, s, 0)),
        compiler_params=pltpu.CompilerParams(
            dimension_semantics=("parallel", "parallel")),
    )(x_f32, w1t, b1_2d, w2t, b2_2d, odd1t, m1, omega, e2)


def reference(x, w1, b1, w2, b2, scale, lora_dim, layer_sequence):
    # Direct translation of the PyTorch forward (dense LoRA matrices), high precision.
    B, S, D = x.shape
    hp = jax.lax.Precision.HIGHEST
    idx = lora_dim * layer_sequence + 1
    lora = x[:, idx:idx + lora_dim, :]
    even = lora[:, ::2, :]
    odd = lora[:, 1::2, :]
    rm = jnp.einsum('bki,bkj->bkij', even, odd, precision=hp)
    half = rm.shape[1] // 2
    m1 = rm[:, :half].reshape(B, -1, D)
    m2 = rm[:, -half:].reshape(B, D, -1)
    tw1 = w1[None] + m1 * scale
    h = jnp.einsum('bsd,bhd->bsh', x, tw1, precision=hp) + b1
    h = 0.5 * h * (1.0 + lax.erf(h / jnp.sqrt(2.0).astype(h.dtype)))
    tw2 = w2[None] + m2 * scale
    return jnp.einsum('bsh,boh->bso', h, tw2, precision=hp) + b2


if __name__ == "__main__":
    # module constraints: lora_dim == 16, num_hiddens == 4*num_input,
    # num_outputs == num_input, seq_len >= lora_token_index + lora_dim
    B, S = 2, 32
    lora_dim = 16
    layer_sequence = 0                           # lora_token_index = 1
    num_input = 128
    num_hiddens = (lora_dim // 4) * num_input    # 512
    num_outputs = num_input                      # 128

    key = jax.random.PRNGKey(0)
    kx, kw1, kw2, kb1, kb2 = jax.random.split(key, 5)
    x = jax.random.normal(kx, (B, S, num_input), dtype=jnp.float32)
    w1 = jax.random.normal(kw1, (num_hiddens, num_input), dtype=jnp.float32) * 0.05
    b1 = jax.random.normal(kb1, (num_hiddens,), dtype=jnp.float32) * 0.05
    w2 = jax.random.normal(kw2, (num_outputs, num_hiddens), dtype=jnp.float32) * 0.05
    b2 = jax.random.normal(kb2, (num_outputs,), dtype=jnp.float32) * 0.05
    scale = jnp.float32(0.001)                   # nn.Parameter(torch.tensor(0.001))

    out = position_wise_ffn_lora(x, w1, b1, w2, b2, scale,
                                 lora_dim=lora_dim, layer_sequence=layer_sequence)
    out = jax.block_until_ready(out)
    assert out.shape == (B, S, num_outputs)

    ref = reference(x, w1, b1, w2, b2, scale, lora_dim, layer_sequence)
    err = float(jnp.max(jnp.abs(out - ref)))
    # Tolerance leaves headroom for possible f32 multi-pass precision-mode differences
    # between the Pallas MXU matmuls and the XLA reference einsums; genuine indexing /
    # LoRA-structure bugs would show up as errors of the size of the LoRA correction
    # (>= ~3e-2 here), well above this threshold.
    assert jnp.allclose(out, ref, atol=1e-2, rtol=1e-2), f"max abs err {err}"
    print("KERNEL_OK")
</pallas_src>

<mosaic_0001>
module attributes {stable_mosaic.version = 11 : i64} {
  func.func @ffn_lora_kernel(%arg0: i32, %arg1: i32, %arg2: memref<1x32x128xf32, #tpu.memory_space<vmem>>, %arg3: memref<128x512xf32, #tpu.memory_space<vmem>>, %arg4: memref<1x512xf32, #tpu.memory_space<vmem>>, %arg5: memref<512x128xf32, #tpu.memory_space<vmem>>, %arg6: memref<1x128xf32, #tpu.memory_space<vmem>>, %arg7: memref<1x128x8xf32, #tpu.memory_space<vmem>>, %arg8: memref<1x8x512xf32, #tpu.memory_space<vmem>>, %arg9: memref<1x512x16xf32, #tpu.memory_space<vmem>>, %arg10: memref<1x16x128xf32, #tpu.memory_space<vmem>>, %arg11: memref<1x32x128xf32, #tpu.memory_space<vmem>>) attributes {dimension_semantics = [#tpu.dimension_semantics<parallel>, #tpu.dimension_semantics<parallel>], iteration_bounds = array<i64: 2, 1>, scalar_prefetch = 0 : i64, scratch_operands = 0 : i64, tpu.core_type = #tpu.core_type<tc>, window_params = [{transform_indices = @transform_0, window_bounds = array<i64: 1, 32, 128>}, {pipeline_mode = #tpu.pipeline_mode<synchronous>, transform_indices = @transform_1, window_bounds = array<i64: 128, 512>}, {pipeline_mode = #tpu.pipeline_mode<synchronous>, transform_indices = @transform_2, window_bounds = array<i64: 1, 512>}, {pipeline_mode = #tpu.pipeline_mode<synchronous>, transform_indices = @transform_3, window_bounds = array<i64: 512, 128>}, {pipeline_mode = #tpu.pipeline_mode<synchronous>, transform_indices = @transform_4, window_bounds = array<i64: 1, 128>}, {transform_indices = @transform_5, window_bounds = array<i64: 1, 128, 8>}, {transform_indices = @transform_6, window_bounds = array<i64: 1, 8, 512>}, {transform_indices = @transform_7, window_bounds = array<i64: 1, 512, 16>}, {transform_indices = @transform_8, window_bounds = array<i64: 1, 16, 128>}, {transform_indices = @transform_9, window_bounds = array<i64: 1, 32, 128>}]} {
    %c0 = arith.constant 0 : index
    %c0_0 = arith.constant 0 : index
    %c0_1 = arith.constant 0 : index
    %0 = vector.load %arg2[%c0, %c0_0, %c0_1] : memref<1x32x128xf32, #tpu.memory_space<vmem>>, vector<1x32x128xf32>
    %1 = vector.shape_cast %0 : vector<1x32x128xf32> to vector<32x128xf32>
    %c0_2 = arith.constant 0 : index
    %c0_3 = arith.constant 0 : index
    %2 = vector.load %arg3[%c0_2, %c0_3] : memref<128x512xf32, #tpu.memory_space<vmem>>, vector<128x512xf32>
    %cst = arith.constant dense<0.000000e+00> : vector<32x512xf32>
    %3 = tpu.matmul %1, %2, %cst {dimension_numbers = #tpu.dot_dimension_numbers<[1], [0], [0], [1], [0, 0, 1, 1], [], []>} : vector<32x128xf32>, vector<128x512xf32>, vector<32x512xf32> -> vector<32x512xf32>
    %c0_4 = arith.constant 0 : index
    %c0_5 = arith.constant 0 : index
    %c0_6 = arith.constant 0 : index
    %4 = vector.load %arg7[%c0_4, %c0_5, %c0_6] : memref<1x128x8xf32, #tpu.memory_space<vmem>>, vector<1x128x8xf32>
    %5 = vector.shape_cast %4 : vector<1x128x8xf32> to vector<128x8xf32>
    %cst_7 = arith.constant dense<0.000000e+00> : vector<32x8xf32>
    %6 = tpu.matmul %1, %5, %cst_7 {dimension_numbers = #tpu.dot_dimension_numbers<[1], [0], [0], [1], [0, 0, 1, 1], [], []>} : vector<32x128xf32>, vector<128x8xf32>, vector<32x8xf32> -> vector<32x8xf32>
    %c0_8 = arith.constant 0 : index
    %c0_9 = arith.constant 0 : index
    %c0_10 = arith.constant 0 : index
    %7 = vector.load %arg8[%c0_8, %c0_9, %c0_10] : memref<1x8x512xf32, #tpu.memory_space<vmem>>, vector<1x8x512xf32>
    %8 = vector.shape_cast %7 : vector<1x8x512xf32> to vector<8x512xf32>
    %cst_11 = arith.constant dense<0.000000e+00> : vector<32x512xf32>
    %9 = tpu.matmul %6, %8, %cst_11 {dimension_numbers = #tpu.dot_dimension_numbers<[1], [0], [0], [1], [0, 0, 1, 1], [], []>} : vector<32x8xf32>, vector<8x512xf32>, vector<32x512xf32> -> vector<32x512xf32>
    %10 = arith.addf %3, %9 : vector<32x512xf32>
    %c0_12 = arith.constant 0 : index
    %c0_13 = arith.constant 0 : index
    %11 = vector.load %arg4[%c0_12, %c0_13] : memref<1x512xf32, #tpu.memory_space<vmem>>, vector<1x512xf32>
    %12 = vector.broadcast %11 : vector<1x512xf32> to vector<32x512xf32>
    %13 = arith.addf %10, %12 : vector<32x512xf32>
    %cst_14 = arith.constant 5.000000e-01 : f32
    %14 = vector.broadcast %cst_14 : f32 to vector<32x512xf32>
    %15 = arith.mulf %14, %13 : vector<32x512xf32>
    %cst_15 = arith.constant 0.707106769 : f32
    %16 = vector.broadcast %cst_15 : f32 to vector<32x512xf32>
    %17 = arith.mulf %13, %16 : vector<32x512xf32>
    %18 = math.erf %17 : vector<32x512xf32>
    %cst_16 = arith.constant 1.000000e+00 : f32
    %19 = vector.broadcast %cst_16 : f32 to vector<32x512xf32>
    %20 = arith.addf %19, %18 : vector<32x512xf32>
    %21 = arith.mulf %15, %20 : vector<32x512xf32>
    %c0_17 = arith.constant 0 : index
    %c0_18 = arith.constant 0 : index
    %22 = vector.load %arg5[%c0_17, %c0_18] : memref<512x128xf32, #tpu.memory_space<vmem>>, vector<512x128xf32>
    %cst_19 = arith.constant dense<0.000000e+00> : vector<32x128xf32>
    %23 = tpu.matmul %21, %22, %cst_19 {dimension_numbers = #tpu.dot_dimension_numbers<[1], [0], [0], [1], [0, 0, 1, 1], [], []>} : vector<32x512xf32>, vector<512x128xf32>, vector<32x128xf32> -> vector<32x128xf32>
    %c0_20 = arith.constant 0 : index
    %c0_21 = arith.constant 0 : index
    %c0_22 = arith.constant 0 : index
    %24 = vector.load %arg9[%c0_20, %c0_21, %c0_22] : memref<1x512x16xf32, #tpu.memory_space<vmem>>, vector<1x512x16xf32>
    %25 = vector.shape_cast %24 : vector<1x512x16xf32> to vector<512x16xf32>
    %cst_23 = arith.constant dense<0.000000e+00> : vector<32x16xf32>
    %26 = tpu.matmul %21, %25, %cst_23 {dimension_numbers = #tpu.dot_dimension_numbers<[1], [0], [0], [1], [0, 0, 1, 1], [], []>} : vector<32x512xf32>, vector<512x16xf32>, vector<32x16xf32> -> vector<32x16xf32>
    %c0_24 = arith.constant 0 : index
    %c0_25 = arith.constant 0 : index
    %c0_26 = arith.constant 0 : index
    %27 = vector.load %arg10[%c0_24, %c0_25, %c0_26] : memref<1x16x128xf32, #tpu.memory_space<vmem>>, vector<1x16x128xf32>
    %28 = vector.shape_cast %27 : vector<1x16x128xf32> to vector<16x128xf32>
    %cst_27 = arith.constant dense<0.000000e+00> : vector<32x128xf32>
    %29 = tpu.matmul %26, %28, %cst_27 {dimension_numbers = #tpu.dot_dimension_numbers<[1], [0], [0], [1], [0, 0, 1, 1], [], []>} : vector<32x16xf32>, vector<16x128xf32>, vector<32x128xf32> -> vector<32x128xf32>
    %30 = arith.addf %23, %29 : vector<32x128xf32>
    %c0_28 = arith.constant 0 : index
    %c0_29 = arith.constant 0 : index
    %31 = vector.load %arg6[%c0_28, %c0_29] : memref<1x128xf32, #tpu.memory_space<vmem>>, vector<1x128xf32>
    %32 = vector.broadcast %31 : vector<1x128xf32> to vector<32x128xf32>
    %33 = arith.addf %30, %32 : vector<32x128xf32>
    %c0_30 = arith.constant 0 : index
    %c0_31 = arith.constant 0 : index
    %c0_32 = arith.constant 0 : index
    %34 = vector.load %arg11[%c0_30, %c0_31, %c0_32] : memref<1x32x128xf32, #tpu.memory_space<vmem>>, vector<1x32x128xf32>
    %35 = vector.shape_cast %34 : vector<1x32x128xf32> to vector<32x128xf32>
    %36 = vector.shape_cast %33 : vector<32x128xf32> to vector<1x32x128xf32>
    tpu.vector_store %arg11[%c0_30, %c0_31, %c0_32], %36 {strides = array<i32>} : memref<1x32x128xf32, #tpu.memory_space<vmem>>, vector<1x32x128xf32>,
    return
  }
  func.func @transform_0(%arg0: i32, %arg1: i32) -> (i32, i32, i32) {
    %c0_i32 = arith.constant 0 : i32
    %c0_i32_0 = arith.constant 0 : i32
    return %arg0, %arg1, %c0_i32 : i32, i32, i32
  }
  func.func @transform_1(%arg0: i32, %arg1: i32) -> (i32, i32) {
    %c0_i32 = arith.constant 0 : i32
    %c0_i32_0 = arith.constant 0 : i32
    %c0_i32_1 = arith.constant 0 : i32
    return %c0_i32, %c0_i32_0 : i32, i32
  }
  func.func @transform_2(%arg0: i32, %arg1: i32) -> (i32, i32) {
    %c0_i32 = arith.constant 0 : i32
    %c0_i32_0 = arith.constant 0 : i32
    %c0_i32_1 = arith.constant 0 : i32
    return %c0_i32, %c0_i32_0 : i32, i32
  }
  func.func @transform_3(%arg0: i32, %arg1: i32) -> (i32, i32) {
    %c0_i32 = arith.constant 0 : i32
    %c0_i32_0 = arith.constant 0 : i32
    %c0_i32_1 = arith.constant 0 : i32
    return %c0_i32, %c0_i32_0 : i32, i32
  }
  func.func @transform_4(%arg0: i32, %arg1: i32) -> (i32, i32) {
    %c0_i32 = arith.constant 0 : i32
    %c0_i32_0 = arith.constant 0 : i32
    %c0_i32_1 = arith.constant 0 : i32
    return %c0_i32, %c0_i32_0 : i32, i32
  }
  func.func @transform_5(%arg0: i32, %arg1: i32) -> (i32, i32, i32) {
    %c0_i32 = arith.constant 0 : i32
    %c0_i32_0 = arith.constant 0 : i32
    %c0_i32_1 = arith.constant 0 : i32
    return %arg0, %c0_i32, %c0_i32_0 : i32, i32, i32
  }
  func.func @transform_6(%arg0: i32, %arg1: i32) -> (i32, i32, i32) {
    %c0_i32 = arith.constant 0 : i32
    %c0_i32_0 = arith.constant 0 : i32
    %c0_i32_1 = arith.constant 0 : i32
    return %arg0, %c0_i32, %c0_i32_0 : i32, i32, i32
  }
  func.func @transform_7(%arg0: i32, %arg1: i32) -> (i32, i32, i32) {
    %c0_i32 = arith.constant 0 : i32
    %c0_i32_0 = arith.constant 0 : i32
    %c0_i32_1 = arith.constant 0 : i32
    return %arg0, %c0_i32, %c0_i32_0 : i32, i32, i32
  }
  func.func @transform_8(%arg0: i32, %arg1: i32) -> (i32, i32, i32) {
    %c0_i32 = arith.constant 0 : i32
    %c0_i32_0 = arith.constant 0 : i32
    %c0_i32_1 = arith.constant 0 : i32
    return %arg0, %c0_i32, %c0_i32_0 : i32, i32, i32
  }
  func.func @transform_9(%arg0: i32, %arg1: i32) -> (i32, i32, i32) {
    %c0_i32 = arith.constant 0 : i32
    %c0_i32_0 = arith.constant 0 : i32
    return %arg0, %arg1, %c0_i32 : i32, i32, i32
  }
}

</mosaic_0001>

<bundles_post_ra>
// kernel: tpu_custom_call.1
= control target key start
LH: loop header
LB: loop body
LE: loop exit
PB: predicated region body
PF: predicated region fallthrough
CT: control target
= control target key end

     0   :  { %s3373_s0 = inlined_call_operand.vmem [shape: f32[2,32,128], index: 0, kind: input, shape index: {}]   ;;  %s3374_s1 = inlined_call_operand.vmem [shape: f32[128,512], index: 1, kind: input, shape index: {}]   ;;  %s3375_s2 = inlined_call_operand.vmem [shape: f32[1,512], index: 2, kind: input, shape index: {}]   ;;  %s3376_s3 = inlined_call_operand.vmem [shape: f32[512,128], index: 3, kind: input, shape index: {}]   ;;  %s3377_s4 = inlined_call_operand.vmem [shape: f32[1,128], index: 4, kind: input, shape index: {}]   ;;  %s3378_s5 = inlined_call_operand.vmem [shape: f32[2,128,8], index: 5, kind: input, shape index: {}]   ;;  %s3379_s6 = inlined_call_operand.vmem [shape: f32[2,8,512], index: 6, kind: input, shape index: {}]   ;;  %s3380_s7 = inlined_call_operand.vmem [shape: f32[2,512,16], index: 7, kind: input, shape index: {}]   ;;  %s3381_s8 = inlined_call_operand.vmem [shape: f32[2,16,128], index: 8, kind: input, shape index: {}]   ;;  %s3382_s9 = inlined_call_operand.hbm [shape: f32[2,32,128], index: 9, kind: output, shape index: {}]  }
   0x1   :  { %3383 = sst [smem:[#allocation5_spill]] %s3373_s0 }
   0x2   :  { %14 = vsyncpa [#allocation3], 0 }
   0x3   :  { %16 = vsyncpa [#allocation3 + $0x1], 0  ;;  %s2586_s30 = smov 0   ;;  %s2588_s10 = smov 0  }
   0x4   :  { %s2590_s11 = smov 0   ;;  %s2592_s12 = smov 0  }
   0x5   :  { %s2594_s13 = smov 0   ;;  %s2596_s14 = smov 0  }
   0x6 LB: > { %s1828_s15 = sadd.s32 4294967295, %s2530_s14   ;;  %s1829_s16 = sadd.s32 4294967294, %s2530_s14   ;;  %s2530_s14 = sphi %s2596_s14, %s22_s14   ;;  %s2526_s13 = sphi %s2594_s13, %s3391_s13   ;;  %s2522_s12 = sphi %s2592_s12, %s3390_s12   ;;  %s2518_s11 = sphi %s2590_s11, %s3389_s11   ;;  %s2514_s10 = sphi %s2588_s10, %s3388_s10   ;;  %s2510_s30 = sphi %s2586_s30, %s3387_s30  }
   0x7   : > { %s34_s17 = sadd.s32 1, %s2526_s13  ;;  %s259_s18 = sadd.s32 1, %s2518_s11 }
   0x8   : > { %p36_p0 = scmp.ge.s32.totalorder %s34_s17, 2  ;;  %p269_p1 = scmp.ne.s32.totalorder %s2518_s11, %s2514_s10 }
   0x9   : > { %p270_p2 = scmp.eq.s32.totalorder %s1828_s15, 1  ;;  %p275_p3 = scmp.ne.s32.totalorder %s2514_s10, %s2510_s30 }
   0xa   : > { %s3393_s17 = smov (%p36_p0, %s34_s17), 0  ;;  %p276_p5 = scmp.eq.s32.totalorder %s1829_s16, 1 }
   0xb   : > { %p2626_p4 = por %p270_p2, %p269_p1  ;;  %s254_s20 = ssub.s32 %s2526_s13, %s3393_s17 }
   0xc   : > { %p1832_p6 = scmp.ge.s32.totalorder %s2530_s14, 1  ;;  %p257_p7 = scmp.eq.s32.totalorder %s254_s20, 0 }
   0xd   : > { %p2633_p8 = por %p276_p5, %p275_p3  ;;  %p351_p9 = scmp.lt.s32.totalorder %s2530_s14, 3 }
   0xe   : > { %s2639_s22 = scalar_select %p257_p7, %s2518_s11, %s259_s18  }
   0xf   : > { %p352_p10 = pnand %p1832_p6, %p351_p9 }
  0x10   : > { %p412_p11 = scmp.lt.s32.totalorder (!%p352_p10), %s2522_s12, 1  ;;  %s3386_s0 = sld [smem:[#allocation5_spill]] (!%p352_p10)  ;;  %v2532_v30 = vmov (!%p352_p10), 0.0   ;;  %v447_v50 = vld [vmem:[%s3374_s1 + $0x8] sm:$0xff] (!%p352_p10)  ;;  %vm615_vm0 = vcmask (!%p352_p10), 64512   ;;  %v446_v58 = vld [vmem:[%s3374_s1] sm:$0xff] (!%p352_p10) }
  0x11   : > { %355 = sbr.rel (%p352_p10) target bundleno = 1088 (0x440), region = 56  ;;  %692 = vmatprep.mubr.f32.mxu1 (!%p352_p10), %v2532_v30  ;;  %v451_v51 = vld [vmem:[%s3374_s1 + $0x28] sm:$0xff] (!%p352_p10)  ;;  %v450_v59 = vld [vmem:[%s3374_s1 + $0x20] sm:$0xff] (!%p352_p10)  ;;  %vm1402_vm1 = vcmask (!%p352_p10), 130048  }
  0x12   : > { %v2150_v54 = vpack.c.bf16 (!%p352_p10), %v451_v51, %v447_v50  ;;  %v455_v60 = vld [vmem:[%s3374_s1 + $0x48] sm:$0xff] (!%p352_p10)  ;;  %v2152_v62 = vpack.c.bf16 (!%p352_p10), %v450_v59, %v446_v58  ;;  %v461_v50 = vld [vmem:[%s3374_s1 + $0x78] sm:$0xff] (!%p352_p10)  ;;  %v464_v59 = vld [vmem:[%s3374_s1 + $0x90] sm:$0xff] (!%p352_p10) }
  0x13   : > { %v459_v61 = vld [vmem:[%s3374_s1 + $0x68] sm:$0xff] (!%p352_p10) }
  0x14   : > { %v2154_v63 = vpack.c.bf16 (!%p352_p10), %v459_v61, %v455_v60  ;;  %v468_v60 = vld [vmem:[%s3374_s1 + $0xb0] sm:$0xff] (!%p352_p10)  ;;  %v473_v61 = vld [vmem:[%s3374_s1 + $0xd8] sm:$0xff] (!%p352_p10) }
  0x18   : > { %s2643_s23 = scalar_select %p412_p11, %s2522_s12, 1 }
  0x1a   : > { %s1863_s24 = sshll.u32 %s2643_s23, 7  ;;  %s1862_s28 = sshll.u32 %s2643_s23, 5 }
  0x1b   : > { %s2649_s27 = scalar_lea.vmem %s3378_s5, %s1863_s24  ;;  %s2661_s16 = scalar_lea.vmem %s3386_s0, %s1862_s28 }
  0x1c   : > { %v510_v0 = vld [vmem:[%s2649_s27] sm:$0xff]  ;;  %v511_v1 = vld [vmem:[%s2649_s27 + $0x8] sm:$0xff]  ;;  %v512_v2 = vld [vmem:[%s2649_s27 + $0x10] sm:$0xff]  ;;  %s2666_s24 = scalar_lea.vmem %s3379_s6, %s1862_s28  ;;  %s1865_s25 = sshll.u32 %s2643_s23, 9 }
  0x1d   : > { %v2118_v3 = vpack.c.bf16 %v511_v1, %v510_v0  ;;  %v513_v4 = vld [vmem:[%s2649_s27 + $0x18] sm:$0xff]  ;;  %v514_v6 = vld [vmem:[%s2649_s27 + $0x20] sm:$0xff]  ;;  %v515_v7 = vld [vmem:[%s2649_s27 + $0x28] sm:$0xff]  ;;  %s2702_s28 = scalar_lea.vmem %s3380_s7, %s1865_s25  ;;  %s1866_s18 = sshll.u32 %s2643_s23, 4 }
  0x1e   : > { %v2122_v5 = vpack.c.bf16 %v513_v4, %v512_v2  ;;  %v2126_v8 = vpack.c.bf16 %v515_v7, %v514_v6  ;;  %v2669_v9 = vld [vmem:[%s2661_s16] sm:$0xff]  ;;  %v516_v10 = vld [vmem:[%s2649_s27 + $0x30] sm:$0xff]  ;;  %v517_v11 = vld [vmem:[%s2649_s27 + $0x38] sm:$0xff]  ;;  %s440_s25 = scalar_lea.vmem %s3381_s8, %s1866_s18  ;;  %s408_s23 = sand.u32 1, %s2514_s10  }
  0x1f   : > { %2119 = vmatprep.subr.bf16.mxu0 %v2118_v3  ;;  %2102 = vmatprep.mubr.f32.mxu0 %v2669_v9  ;;  %v612_v12 = vld [vmem:[%s2666_s24 + $0x8] sm:$0xff]  ;;  %v2130_v13 = vpack.c.bf16 %v517_v11, %v516_v10  ;;  %v518_v14 = vld [vmem:[%s2649_s27 + $0x40] sm:$0xff]  ;;  %v520_v17 = vld [vmem:[%s2649_s27 + $0x50] sm:$0xff]  ;;  %s1833_s29 = sshll.u32 %s408_s23, 5 }
  0x20   : > { %2121 = vmatpush3.bf16.msra.mxu0 %v2118_v3  ;;  %628 = vmatprep.subr.mxu1 %v612_v12  ;;  %v519_v15 = vld [vmem:[%s2649_s27 + $0x48] sm:$0xff]  ;;  %v521_v18 = vld [vmem:[%s2649_s27 + $0x58] sm:$0xff]  ;;  %v522_v20 = vld [vmem:[%s2649_s27 + $0x60] sm:$0xff]  ;;  %s410_s18 = scalar_lea.vmem [#allocation2], %s1833_s29 }
  0x21   : > { %2123 = vmatprep.subr.bf16.mxu0 %v2122_v5  ;;  %v2134_v16 = vpack.c.bf16 %v519_v15, %v518_v14  ;;  %v2138_v19 = vpack.c.bf16 %v521_v18, %v520_v17  ;;  %v523_v21 = vld [vmem:[%s2649_s27 + $0x68] sm:$0xff]  ;;  %v524_v23 = vld [vmem:[%s2649_s27 + $0x70] sm:$0xff]  ;;  %v525_v24 = vld [vmem:[%s2649_s27 + $0x78] sm:$0xff]  ;;  %s1701_s20 = sshll.u32 %s410_s18, 4  ;;  %s3318_s20 = int_to_ptr.vmem [resolvable:$true] %s1701_s20 }
  0x22   : > { %v2142_v22 = vpack.c.bf16 %v523_v21, %v522_v20  ;;  %v2146_v25 = vpack.c.bf16 %v525_v24, %v524_v23  ;;  %v2684_v26 = vld [vmem:[%s2661_s16 + $0x8] sm:$0xff]  ;;  %v2687_v27 = vld [vmem:[%s2661_s16 + $0x10] sm:$0xff]  ;;  %v2692_v28 = vld [vmem:[%s2661_s16 + $0x18] sm:$0xff]  ;;  %s2452_s27 = scalar_lea.vmem %s3318_s20, 512 }
  0x23   : > { %v611_v29 = vld [vmem:[%s2666_s24] sm:$0xff]  ;;  %v614_v31 = vld [vmem:[%s2666_s24 + $0x18] sm:$0xff]  ;;  %v1183_v33 = vld [vmem:[%s2702_s28 + $0x88] sm:$0xff]  ;;  %p2453_p12 = scmp.ne.s32.totalorder %s3318_s20, %s2452_s27 }
  0x24   : > { %2125 = vmatpush3.bf16.msra.mxu0 %v2122_v5  ;;  %629 = vmatpush1.msra.mxu1 %v611_v29  ;;  %v1182_v32 = vld [vmem:[%s2702_s28 + $0x80] sm:$0xff]  ;;  %v1167_v36 = vld [vmem:[%s2702_s28 + $0x8] sm:$0xff]  ;;  %v1184_v37 = vld [vmem:[%s2702_s28 + $0x90] sm:$0xff] }
  0x25   : > { %2127 = vmatprep.subr.bf16.mxu0 %v2126_v8  ;;  %717 = vmatprep.subr.mxu1 %v614_v31  ;;  %v1166_v34 = vld [vmem:[%s2702_s28] sm:$0xff]  ;;  %v2214_v35 = vpack.c.bf16 %v1183_v33, %v1182_v32  ;;  %v1185_v38 = vld [vmem:[%s2702_s28 + $0x98] sm:$0xff]  ;;  %v1168_v41 = vld [vmem:[%s2702_s28 + $0x10] sm:$0xff]  ;;  %p2454_p13 = pnand %p2453_p12, %p2626_p4 }
  0x26   : > { %v2216_v39 = vpack.c.bf16 %v1167_v36, %v1166_v34  ;;  %v2218_v40 = vpack.c.bf16 %v1185_v38, %v1184_v37  ;;  %v1169_v42 = vld [vmem:[%s2702_s28 + $0x18] sm:$0xff]  ;;  %v1186_v43 = vld [vmem:[%s2702_s28 + $0xa0] sm:$0xff]  ;;  %v1187_v44 = vld [vmem:[%s2702_s28 + $0xa8] sm:$0xff] }
  0x27   : > { %v2220_v45 = vpack.c.bf16 %v1169_v42, %v1168_v41  ;;  %v2222_v46 = vpack.c.bf16 %v1187_v44, %v1186_v43  ;;  %v1170_v47 = vld [vmem:[%s2702_s28 + $0x20] sm:$0xff]  ;;  %v1171_v48 = vld [vmem:[%s2702_s28 + $0x28] sm:$0xff]  ;;  %v613_v53 = vld [vmem:[%s2666_s24 + $0x10] sm:$0xff]  ;;  %s1867_s24 = sshll.u32 %s2522_s12, 9  ;;  %p2455_p0 = pneg %p2454_p13 }
  0x28   : > { %2129 = vmatpush3.bf16.msra.mxu0 %v2126_v8  ;;  %v2224_v49 = vpack.c.bf16 %v1171_v48, %v1170_v47  ;;  %v454_v0 = vld [vmem:[%s3374_s1 + $0x40] sm:$0xff]  ;;  %v463_v2 = vld [vmem:[%s3374_s1 + $0x88] sm:$0xff]  ;;  %v449_v43 = vld [vmem:[%s3374_s1 + $0x18] sm:$0xff]  ;;  %s3323_s26 = scalar_lea.hbm %s3382_s9, %s1867_s24  ;;  %s2533_s12 = smov [#allocation2]  }
  0x29   : > { %2131 = vmatprep.subr.bf16.mxu0 %v2130_v13  ;;  %v458_v1 = vld [vmem:[%s3374_s1 + $0x60] sm:$0xff]  ;;  %v467_v3 = vld [vmem:[%s3374_s1 + $0xa8] sm:$0xff]  ;;  %v453_v44 = vld [vmem:[%s3374_s1 + $0x38] sm:$0xff]  ;;  %s2456_s29 = sshll.u32 %s2533_s12, 4  ;;  %s2457_s29 = int_to_ptr.vmem [resolvable:$false] %s2456_s29 }
  0x2a   : > { %v2156_v4 = vpack.c.bf16 %v458_v1, %v454_v0  ;;  %v2158_v5 = vpack.c.bf16 %v467_v3, %v463_v2  ;;  %v462_v6 = vld [vmem:[%s3374_s1 + $0x80] sm:$0xff]  ;;  %v471_v8 = vld [vmem:[%s3374_s1 + $0xc8] sm:$0xff]  ;;  %v448_v47 = vld [vmem:[%s3374_s1 + $0x10] sm:$0xff]  ;;  %s2458_s15 = scalar_lea.vmem %s2457_s29, 1024  ;;  %p2459_p1 = scmp.lt.s32.totalorder %s3318_s20, %s2457_s29 }
  0x2b   : > { %v466_v7 = vld [vmem:[%s3374_s1 + $0xa0] sm:$0xff]  ;;  %v475_v10 = vld [vmem:[%s3374_s1 + $0xe8] sm:$0xff]  ;;  %v452_v48 = vld [vmem:[%s3374_s1 + $0x30] sm:$0xff]  ;;  %p2460_p2 = scmp.lt.s32.totalorder %s2458_s15, %s2452_s27 }
  0x2c   : > { %2133 = vmatpush3.bf16.msra.mxu0 %v2130_v13  ;;  %v2160_v11 = vpack.c.bf16 %v466_v7, %v462_v6  ;;  %v2162_v12 = vpack.c.bf16 %v475_v10, %v471_v8  ;;  %v470_v13 = vld [vmem:[%s3374_s1 + $0xc0] sm:$0xff]  ;;  %v479_v15 = vld [vmem:[%s3374_s1 + $0x108] sm:$0xff]  ;;  %v2184_v51 = vpack.c.bf16 %v452_v48, %v448_v47  ;;  %v472_v1 = vld [vmem:[%s3374_s1 + $0xd0] sm:$0xff] }
  0x2d   : > { %2135 = vmatprep.subr.bf16.mxu0 %v2134_v16  ;;  %v474_v14 = vld [vmem:[%s3374_s1 + $0xe0] sm:$0xff]  ;;  %v487_v21 = vld [vmem:[%s3374_s1 + $0x148] sm:$0xff]  ;;  %v476_v2 = vld [vmem:[%s3374_s1 + $0xf0] sm:$0xff]  ;;  %p2461_p3 = por %p2460_p2, %p2459_p1 }
  0x2e   : > { %v2164_v17 = vpack.c.bf16 %v474_v14, %v470_v13  ;;  %v482_v20 = vld [vmem:[%s3374_s1 + $0x120] sm:$0xff]  ;;  %v495_v31 = vld [vmem:[%s3374_s1 + $0x188] sm:$0xff]  ;;  %v481_v3 = vld [vmem:[%s3374_s1 + $0x118] sm:$0xff] }
  0x2f   : > { %v490_v29 = vld [vmem:[%s3374_s1 + $0x160] sm:$0xff]  ;;  %v499_v32 = vld [vmem:[%s3374_s1 + $0x1a8] sm:$0xff]  ;;  %v480_v7 = vld [vmem:[%s3374_s1 + $0x110] sm:$0xff]  ;;  %p2462_p5 = pnand %p2461_p3, %p2455_p0 }
  0x30   : > { %2137 = vmatpush3.bf16.msra.mxu0 %v2134_v16  ;;  %v483_v16 = vld [vmem:[%s3374_s1 + $0x128] sm:$0xff]  ;;  %v2174_v34 = vpack.c.bf16 %v499_v32, %v495_v31  ;;  %v498_v36 = vld [vmem:[%s3374_s1 + $0x1a0] sm:$0xff]  ;;  %v484_v8 = vld [vmem:[%s3374_s1 + $0x130] sm:$0xff] }
  0x31   : > { %2139 = vmatprep.subr.bf16.mxu0 %v2138_v19  ;;  %v2166_v18 = vpack.c.bf16 %v483_v16, %v479_v15  ;;  %v503_v37 = vld [vmem:[%s3374_s1 + $0x1c8] sm:$0xff]  ;;  %v502_v41 = vld [vmem:[%s3374_s1 + $0x1c0] sm:$0xff]  ;;  %v489_v10 = vld [vmem:[%s3374_s1 + $0x158] sm:$0xff] }
  0x32   : > { %v507_v38 = vld [vmem:[%s3374_s1 + $0x1e8] sm:$0xff]  ;;  %v506_v42 = vld [vmem:[%s3374_s1 + $0x1e0] sm:$0xff]  ;;  %v488_v14 = vld [vmem:[%s3374_s1 + $0x150] sm:$0xff] }
  0x33   : > { %v492_v15 = vld [vmem:[%s3374_s1 + $0x170] sm:$0xff]  ;;  %v497_v16 = vld [vmem:[%s3374_s1 + $0x198] sm:$0xff]  ;;  %v1195_v47 = vld [vmem:[%s2702_s28 + $0xe8] sm:$0xff] }
  0x34   : > { %2141 = vmatpush3.bf16.msra.mxu0 %v2138_v19  ;;  %v478_v19 = vld [vmem:[%s3374_s1 + $0x100] sm:$0xff]  ;;  %v508_v31 = vld [vmem:[%s3374_s1 + $0x1f0] sm:$0xff] }
  0x35   : > { %2143 = vmatprep.subr.bf16.mxu0 %v2142_v22  ;;  %v2168_v23 = vpack.c.bf16 %v482_v20, %v478_v19  ;;  %v496_v20 = vld [vmem:[%s3374_s1 + $0x190] sm:$0xff] }
  0x38   : > { %2145 = vmatpush3.bf16.msra.mxu0 %v2142_v22  ;;  %v491_v22 = vld [vmem:[%s3374_s1 + $0x168] sm:$0xff] }
  0x39   : > { %2147 = vmatprep.subr.bf16.mxu0 %v2146_v25  ;;  %v2170_v24 = vpack.c.bf16 %v491_v22, %v487_v21  ;;  %v500_v21 = vld [vmem:[%s3374_s1 + $0x1b0] sm:$0xff]  ;;  %v505_v22 = vld [vmem:[%s3374_s1 + $0x1d8] sm:$0xff] }
  0x3c   : > { %2149 = vmatpush3.bf16.msra.mxu0 %v2146_v25  ;;  %v486_v25 = vld [vmem:[%s3374_s1 + $0x140] sm:$0xff] }
  0x3d   : > { %2215 = vmatprep.subr.bf16.mxu0 %v2214_v35  ;;  %v2172_v33 = vpack.c.bf16 %v490_v29, %v486_v25  ;;  %v494_v35 = vld [vmem:[%s3374_s1 + $0x180] sm:$0xff]  ;;  %v504_v29 = vld [vmem:[%s3374_s1 + $0x1d0] sm:$0xff] }
  0x3e   : > { %v2212_v32 = vpack.c.bf16 %v508_v31, %v504_v29 }
  0x3f   : > { %2103 = vmatmul.mubr.f32.vlgmr.msra.gmra.mrb[0].mxu0 %v2684_v26 }
  0x40   : > { %2105 = vmatprep.mubr.f32.mxu0 %v2687_v27  ;;  %2217 = vmatpush3.bf16.msra.mxu0 %v2216_v39  ;;  %v2176_v39 = vpack.c.bf16 %v498_v36, %v494_v35  ;;  %v1172_v35 = vld [vmem:[%s2702_s28 + $0x30] sm:$0xff]  ;;  %v1173_v36 = vld [vmem:[%s2702_s28 + $0x38] sm:$0xff] }
  0x41   : > { %2219 = vmatprep.subr.bf16.mxu0 %v2218_v40  ;;  %v2178_v40 = vpack.c.bf16 %v507_v38, %v503_v37  ;;  %v1190_v37 = vld [vmem:[%s2702_s28 + $0xc0] sm:$0xff]  ;;  %v1191_v38 = vld [vmem:[%s2702_s28 + $0xc8] sm:$0xff] }
  0x43   : > { %2106 = vmatmul.mubr.f32.gmra.mrb[2].mxu0 %v2692_v28 }
  0x44   : > { %2221 = vmatpush3.bf16.msra.mxu0 %v2220_v45  ;;  %v2180_v45 = vpack.c.bf16 %v506_v42, %v502_v41  ;;  %v1193_v41 = vld [vmem:[%s2702_s28 + $0xd8] sm:$0xff] }
  0x45   : > { %2223 = vmatprep.subr.bf16.mxu0 %v2222_v46  ;;  %v2182_v46 = vpack.c.bf16 %v453_v44, %v449_v43  ;;  %v1176_v43 = vld [vmem:[%s2702_s28 + $0x50] sm:$0xff]  ;;  %v1177_v44 = vld [vmem:[%s2702_s28 + $0x58] sm:$0xff] }
  0x48   : > { %2225 = vmatpush3.bf16.msra.mxu0 %v2224_v49  ;;  %v457_v49 = vld [vmem:[%s3374_s1 + $0x58] sm:$0xff] }
 0x112   : > { %v2104_v52 = vpop.f32.mrb[0].mxu0 }
 0x113   : > { %v592_v55 = vpop.f32.mrb[1].mxu0 }
 0x114   : > { %1844 = vmatmul.mubr.msk.f32.vlgmr.msra.gmra.mrb[0].mxu1 %vm615_vm0, %v592_v55 }
 0x115   : > { %718 = vmatpush1.msra.mxu1 %v613_v53  ;;  %698 = vmatprep.mubr.f32.mxu1 %v2532_v30  ;;  %v456_v53 = vld [vmem:[%s3374_s1 + $0x50] sm:$0xff] }
 0x116   : > { %v2107_v56 = vpop.f32.mrb[2].mxu0  ;;  %2151 = vmatprep.subr.bf16.mxu1 %v2150_v54  ;;  %v460_v54 = vld [vmem:[%s3374_s1 + $0x70] sm:$0xff] }
 0x117   : > { %v602_v57 = vpop.f32.mrb[3].mxu0 }
 0x118   : > { %1845 = vmatmul.mubr.msk.f32.gmra.mrb[2].mxu1 %vm615_vm0, %v2104_v52 }
 0x119   : > { %704 = vmatprep.mubr.f32.mxu1 %v2532_v30 }
 0x11c   : > { %1846 = vmatmul.mubr.msk.f32.gmra.mrb[4].mxu1 %vm615_vm0, %v602_v57 }
 0x11d   : > { %710 = vmatprep.mubr.f32.mxu1 %v2532_v30 }
 0x120   : > { %1847 = vmatmul.mubr.msk.f32.gmra.mrb[6].mxu1 %vm615_vm0, %v2107_v56 }
 0x121   : > { %781 = vmatprep.mubr.f32.mxu1 %v2532_v30 }
 0x124   : > { %1848 = vmatmul.mubr.msk.f32.vlgmr.msra.gmra.mrb[8].mxu1 %vm615_vm0, %v592_v55  ;;  %v465_v55 = vld [vmem:[%s3374_s1 + $0x98] sm:$0xff] }
 0x125   : > { %2153 = vmatpush1.bf16.msra.mxu1 %v2152_v62  ;;  %787 = vmatprep.mubr.f32.mxu1 %v2532_v30  ;;  %v477_v62 = vld [vmem:[%s3374_s1 + $0xf8] sm:$0xff] }
 0x126   : > { %2155 = vmatprep.subr.bf16.mxu1 %v2154_v63  ;;  %v2192_v63 = vpack.c.bf16 %v468_v60, %v464_v59  ;;  %v2194_v0 = vpack.c.bf16 %v477_v62, %v473_v61  ;;  %v1215_v59 = vld [vmem:[%s2702_s28 + $0x188] sm:$0xff]  ;;  %v986_v61 = vlaneseq }
 0x128   : > { %1849 = vmatmul.mubr.msk.f32.gmra.mrb[10].mxu1 %vm615_vm0, %v2104_v52  ;;  %v2186_v52 = vpack.c.bf16 %v461_v50, %v457_v49  ;;  %v1178_v49 = vld [vmem:[%s2702_s28 + $0x60] sm:$0xff]  ;;  %v1179_v50 = vld [vmem:[%s2702_s28 + $0x68] sm:$0xff]  ;;  %v2962_v62 = vshrl.u32 %v986_v61, 7 }
 0x129   : > { %2157 = vmatpush1.bf16.msra.mxu1 %v2156_v4  ;;  %793 = vmatprep.mubr.f32.mxu1 %v2532_v30  ;;  %v485_v4 = vld [vmem:[%s3374_s1 + $0x138] sm:$0xff] }
 0x12a   : > { %2159 = vmatprep.subr.bf16.mxu1 %v2158_v5  ;;  %v2196_v5 = vpack.c.bf16 %v476_v2, %v472_v1  ;;  %v2198_v6 = vpack.c.bf16 %v485_v4, %v481_v3  ;;  %v992_v1 = vsub.s32 1, %v2962_v62 }
 0x12c   : > { %1850 = vmatmul.mubr.msk.f32.gmra.mrb[12].mxu1 %vm615_vm0, %v602_v57  ;;  %v2188_v57 = vpack.c.bf16 %v460_v54, %v456_v53  ;;  %v1197_v53 = vld [vmem:[%s2702_s28 + $0xf8] sm:$0xff] }
 0x12d   : > { %2161 = vmatpush1.bf16.msra.mxu1 %v2160_v11  ;;  %799 = vmatprep.mubr.f32.mxu1 %v2532_v30  ;;  %v493_v11 = vld [vmem:[%s3374_s1 + $0x178] sm:$0xff] }
 0x12e   : > { %2163 = vmatprep.subr.bf16.mxu1 %v2162_v12  ;;  %v2200_v12 = vpack.c.bf16 %v484_v8, %v480_v7  ;;  %v2202_v13 = vpack.c.bf16 %v493_v11, %v489_v10 }
 0x130   : > { %1851 = vmatmul.mubr.msk.f32.gmra.mrb[14].mxu1 %vm615_vm0, %v2107_v56  ;;  %v469_v56 = vld [vmem:[%s3374_s1 + $0xb8] sm:$0xff] }
 0x131   : > { %2165 = vmatpush1.bf16.msra.mxu1 %v2164_v17  ;;  %870 = vmatprep.mubr.f32.mxu1 %v2532_v30  ;;  %v2190_v58 = vpack.c.bf16 %v469_v56, %v465_v55  ;;  %v501_v17 = vld [vmem:[%s3374_s1 + $0x1b8] sm:$0xff]  ;;  %v1180_v55 = vld [vmem:[%s2702_s28 + $0x70] sm:$0xff] }
 0x132   : > { %2167 = vmatprep.subr.bf16.mxu1 %v2166_v18  ;;  %v2204_v18 = vpack.c.bf16 %v492_v15, %v488_v14  ;;  %v2206_v19 = vpack.c.bf16 %v501_v17, %v497_v16  ;;  %v1181_v56 = vld [vmem:[%s2702_s28 + $0x78] sm:$0xff] }
 0x135   : > { %2169 = vmatpush1.bf16.msra.mxu1 %v2168_v23  ;;  %v509_v23 = vld [vmem:[%s3374_s1 + $0x1f8] sm:$0xff] }
 0x136   : > { %2171 = vmatprep.subr.bf16.mxu1 %v2170_v24  ;;  %v2208_v24 = vpack.c.bf16 %v500_v21, %v496_v20  ;;  %v2210_v25 = vpack.c.bf16 %v509_v23, %v505_v22 }
 0x139   : > { %2173 = vmatpush1.bf16.msra.mxu1 %v2172_v33  ;;  %v1188_v33 = vld [vmem:[%s2702_s28 + $0xb0] sm:$0xff] }
 0x13a   : > { %2175 = vmatprep.subr.bf16.mxu1 %v2174_v34  ;;  %v1189_v34 = vld [vmem:[%s2702_s28 + $0xb8] sm:$0xff] }
 0x13d   : > { %2177 = vmatpush1.bf16.msra.mxu1 %v2176_v39 }
 0x13e   : > { %2179 = vmatprep.subr.bf16.mxu1 %v2178_v40  ;;  %v1192_v40 = vld [vmem:[%s2702_s28 + $0xd0] sm:$0xff] }
 0x13f   : > { %v2234_v42 = vpack.c.bf16 %v1193_v41, %v1192_v40 }
 0x141   : > { %2181 = vmatpush1.bf16.msra.mxu1 %v2180_v45  ;;  %v2236_v45 = vpack.c.bf16 %v1177_v44, %v1176_v43 }
 0x142   : > { %2183 = vmatprep.subr.bf16.mxu1 %v2182_v46  ;;  %v1194_v46 = vld [vmem:[%s2702_s28 + $0xe0] sm:$0xff] }
 0x143   : > { %v2238_v48 = vpack.c.bf16 %v1195_v47, %v1194_v46  ;;  %v1201_v46 = vld [vmem:[%s2702_s28 + $0x118] sm:$0xff] }
 0x144   : > { %871 = vmatmul.mubr.f32.vlgmr.msra.gmra.mrb[0].mxu1 %v2669_v9 }
 0x145   : > { %2185 = vmatpush1.bf16.msra.mxu1 %v2184_v51  ;;  %876 = vmatprep.mubr.f32.mxu1 %v2532_v30  ;;  %v2240_v51 = vpack.c.bf16 %v1179_v50, %v1178_v49  ;;  %v1218_v49 = vld [vmem:[%s2702_s28 + $0x1a0] sm:$0xff]  ;;  %v1219_v50 = vld [vmem:[%s2702_s28 + $0x1a8] sm:$0xff] }
 0x146   : > { %2187 = vmatprep.subr.bf16.mxu1 %v2186_v52  ;;  %v1196_v52 = vld [vmem:[%s2702_s28 + $0xf0] sm:$0xff] }
 0x147   : > { %v2242_v54 = vpack.c.bf16 %v1197_v53, %v1196_v52 }
 0x148   : > { %877 = vmatmul.mubr.f32.gmra.mrb[2].mxu1 %v2684_v26 }
 0x149   : > { %2189 = vmatpush1.bf16.msra.mxu1 %v2188_v57  ;;  %882 = vmatprep.mubr.f32.mxu1 %v2532_v30  ;;  %v2244_v57 = vpack.c.bf16 %v1181_v56, %v1180_v55 }
 0x14a   : > { %2191 = vmatprep.subr.bf16.mxu1 %v2190_v58  ;;  %v1214_v58 = vld [vmem:[%s2702_s28 + $0x180] sm:$0xff] }
 0x14b   : > { %v2246_v60 = vpack.c.bf16 %v1215_v59, %v1214_v58  ;;  %v2254_v58 = vpack.c.bf16 %v1219_v50, %v1218_v49  ;;  %v1202_v59 = vld [vmem:[%s2702_s28 + $0x120] sm:$0xff] }
 0x14c   : > { %883 = vmatmul.mubr.f32.gmra.mrb[4].mxu1 %v2687_v27 }
 0x14d   : > { %2193 = vmatpush1.bf16.msra.mxu1 %v2192_v63  ;;  %888 = vmatprep.mubr.f32.mxu1 %v2532_v30  ;;  %v988_v63 = vsub.s32 0, %v2962_v62 }
 0x14e   : > { %2195 = vmatprep.subr.bf16.mxu1 %v2194_v0  ;;  %v2968_v0 = vld [vmem:[%s3375_s2] sm:$0xf] }
 0x14f   : > { %v989_v2 = vrot.slane %v2968_v0, %v988_v63  ;;  %v993_v3 = vrot.slane %v2968_v0, %v992_v1  ;;  %v996_v1 = vsub.s32 2, %v2962_v62 }
 0x150   : > { %889 = vmatmul.mubr.f32.gmra.mrb[6].mxu1 %v2692_v28 }
 0x151   : > { %2197 = vmatpush1.bf16.msra.mxu1 %v2196_v5  ;;  %959 = vmatprep.mubr.f32.mxu1 %v2532_v30 }
 0x152   : > { %2199 = vmatprep.subr.bf16.mxu1 %v2198_v6 }
 0x155   : > { %2201 = vmatpush1.bf16.msra.mxu1 %v2200_v12 }
 0x156   : > { %2203 = vmatprep.subr.bf16.mxu1 %v2202_v13 }
 0x159   : > { %2205 = vmatpush1.bf16.msra.mxu1 %v2204_v18 }
 0x15a   : > { %2207 = vmatprep.subr.bf16.mxu1 %v2206_v19 }
 0x15d   : > { %2209 = vmatpush1.bf16.msra.mxu1 %v2208_v24 }
 0x15e   : > { %2211 = vmatprep.subr.bf16.mxu1 %v2210_v25 }
 0x161   : > { %2213 = vmatpush1.bf16.msra.mxu1 %v2212_v32 }
 0x164   : > { %960 = vmatmul.mubr.f32.vlgmr.msra.gmra.mrb[8].mxu1 %v2669_v9  ;;  %v2226_v9 = vpack.c.bf16 %v1189_v34, %v1188_v33 }
 0x165   : > { %965 = vmatprep.mubr.f32.mxu1 %v2532_v30 }
 0x166   : > { %2227 = vmatprep.subr.bf16.mxu0 %v2226_v9 }
 0x168   : > { %966 = vmatmul.mubr.f32.gmra.mrb[10].mxu1 %v2684_v26  ;;  %v2228_v26 = vpack.c.bf16 %v1173_v36, %v1172_v35  ;;  %v1198_v35 = vld [vmem:[%s2702_s28 + $0x100] sm:$0xff]  ;;  %v1199_v36 = vld [vmem:[%s2702_s28 + $0x108] sm:$0xff] }
 0x169   : > { %971 = vmatprep.mubr.f32.mxu1 %v2532_v30  ;;  %v2248_v40 = vpack.c.bf16 %v1199_v36, %v1198_v35 }
 0x16a   : > { %2229 = vmatpush3.bf16.msra.mxu0 %v2228_v26 }
 0x16c   : > { %972 = vmatmul.mubr.f32.gmra.mrb[12].mxu1 %v2687_v27  ;;  %v2230_v27 = vpack.c.bf16 %v1191_v38, %v1190_v37  ;;  %v1216_v38 = vld [vmem:[%s2702_s28 + $0x190] sm:$0xff] }
 0x16d   : > { %977 = vmatprep.mubr.f32.mxu1 %v2532_v30  ;;  %v1174_v30 = vld [vmem:[%s2702_s28 + $0x40] sm:$0xff] }
 0x16e   : > { %2231 = vmatprep.subr.bf16.mxu0 %v2230_v27  ;;  %v1217_v27 = vld [vmem:[%s2702_s28 + $0x198] sm:$0xff] }
 0x16f   : > { %v2250_v44 = vpack.c.bf16 %v1217_v27, %v1216_v38 }
 0x170   : > { %978 = vmatmul.mubr.f32.gmra.mrb[14].mxu1 %v2692_v28  ;;  %v1175_v28 = vld [vmem:[%s2702_s28 + $0x48] sm:$0xff] }
 0x171   : > { %v2232_v39 = vpack.c.bf16 %v1175_v28, %v1174_v30 }
 0x173   : > { %2233 = vmatpush3.bf16.msra.mxu0 %v2232_v39 }
 0x174   : > { %2235 = vmatprep.subr.bf16.mxu0 %v2234_v42 }
 0x177   : > { %2237 = vmatpush3.bf16.msra.mxu0 %v2236_v45  ;;  %v1200_v45 = vld [vmem:[%s2702_s28 + $0x110] sm:$0xff] }
 0x178   : > { %2239 = vmatprep.subr.bf16.mxu0 %v2238_v48 }
 0x17b   : > { %2241 = vmatpush3.bf16.msra.mxu0 %v2240_v51 }
 0x17c   : > { %2243 = vmatprep.subr.bf16.mxu0 %v2242_v54  ;;  %v2252_v54 = vpack.c.bf16 %v1201_v46, %v1200_v45 }
 0x17f   : > { %2245 = vmatpush3.bf16.msra.mxu0 %v2244_v57 }
 0x180   : > { %2247 = vmatprep.subr.bf16.mxu0 %v2246_v60  ;;  %v1203_v60 = vld [vmem:[%s2702_s28 + $0x128] sm:$0xff] }
 0x217   : > { %v872_v4 = vpop.f32.mrb[0].mxu1 }
 0x218   : > { %v1006_v5 = vadd.f32 %v989_v2, %v872_v4  ;;  %v874_v6 = vpop.f32.mrb[1].mxu1 }
 0x219   : > { %v1007_v7 = vadd.f32 %v993_v3, %v874_v6 }
 0x21a   : > { %v1038_v8 = vmul.f32 0.70710677, %v1006_v5  ;;  %v1022_v30 = vmul.f32 0.5, %v1006_v5  ;;  %v1000_v5 = vsub.s32 3, %v2962_v62  ;;  %v3010_v62 = vrot.slane %v2968_v0, %v996_v1 }
 0x21b   : > { %v1039_v10 = vmul.f32 0.70710677, %v1007_v7  ;;  %v878_v11 = vpop.f32.mrb[2].mxu1  ;;  %v1023_v26 = vmul.f32 0.5, %v1007_v7 }
 0x21c   : > { %2420 = verf.f32 %v1038_v8  ;;  %v1010_v12 = vadd.f32 %v989_v2, %v878_v11  ;;  %v880_v13 = vpop.f32.mrb[3].mxu1  ;;  %v2256_v8 = vpack.c.bf16 %v1203_v60, %v1202_v59 }
 0x21d   : > { %2422 = verf.f32 %v1039_v10  ;;  %v1011_v14 = vadd.f32 %v993_v3, %v880_v13 }
 0x21e   : > { %v1042_v15 = vmul.f32 0.70710677, %v1010_v12  ;;  %v1026_v51 = vmul.f32 0.5, %v1010_v12 }
 0x21f   : > { %v1043_v16 = vmul.f32 0.70710677, %v1011_v14  ;;  %v884_v17 = vpop.f32.mrb[4].mxu1  ;;  %v1027_v47 = vmul.f32 0.5, %v1011_v14  ;;  %v1204_v14 = vld [vmem:[%s2702_s28 + $0x130] sm:$0xff] }
 0x220   : > { %2424 = verf.f32 %v1042_v15  ;;  %v1014_v18 = vadd.f32 %v989_v2, %v884_v17  ;;  %v886_v19 = vpop.f32.mrb[5].mxu1  ;;  %v1205_v15 = vld [vmem:[%s2702_s28 + $0x138] sm:$0xff] }
 0x221   : > { %2426 = verf.f32 %v1043_v16  ;;  %v1015_v20 = vadd.f32 %v993_v3, %v886_v19  ;;  %v1223_v19 = vld [vmem:[%s2702_s28 + $0x1c8] sm:$0xff] }
 0x222   : > { %v1046_v21 = vmul.f32 0.70710677, %v1014_v18  ;;  %v1030_v4 = vmul.f32 0.5, %v1014_v18  ;;  %v1222_v18 = vld [vmem:[%s2702_s28 + $0x1c0] sm:$0xff] }
 0x223   : > { %v1047_v22 = vmul.f32 0.70710677, %v1015_v20  ;;  %v890_v23 = vpop.f32.mrb[6].mxu1  ;;  %v1031_v61 = vmul.f32 0.5, %v1015_v20 }
 0x224   : > { %2428 = verf.f32 %v1046_v21  ;;  %v2973_v24 = vadd.f32 %v989_v2, %v890_v23  ;;  %v892_v25 = vpop.f32.mrb[7].mxu1  ;;  %v1220_v2 = vld [vmem:[%s2702_s28 + $0x1b0] sm:$0xff]  ;;  %v3017_v21 = vrot.slane %v2968_v0, %v1000_v5  ;;  %v2260_v23 = vpack.c.bf16 %v1205_v15, %v1204_v14 }
 0x225   : > { %2430 = verf.f32 %v1047_v22  ;;  %v1019_v29 = vadd.f32 %v993_v3, %v892_v25  ;;  %v1221_v3 = vld [vmem:[%s2702_s28 + $0x1b8] sm:$0xff]  ;;  %v1224_v0 = vld [vmem:[%s2702_s28 + $0x1d0] sm:$0xff] }
 0x226   : > { %v2421_v31 = vpop.eup %2420  ;;  %v1050_v32 = vmul.f32 0.70710677, %v2973_v24  ;;  %v2258_v13 = vpack.c.bf16 %v1221_v3, %v1220_v2  ;;  %v1034_v20 = vmul.f32 0.5, %v2973_v24  ;;  %v1212_v3 = vld [vmem:[%s2702_s28 + $0x170] sm:$0xff] }
 0x227   : > { %v2423_v33 = vpop.eup %2422  ;;  %v1070_v34 = vadd.f32 1.0, %v2421_v31  ;;  %v1051_v9 = vmul.f32 0.70710677, %v1019_v29  ;;  %v1035_v16 = vmul.f32 0.5, %v1019_v29  ;;  %v2262_v31 = vpack.c.bf16 %v1223_v19, %v1222_v18  ;;  %v1102_v19 = vld [vmem:[%s3376_s3] sm:$0xff] }
 0x228   : > { %v1071_v37 = vadd.f32 1.0, %v2423_v33  ;;  %2432 = verf.f32 %v1050_v32  ;;  %v1206_v32 = vld [vmem:[%s2702_s28 + $0x140] sm:$0xff]  ;;  %v1207_v33 = vld [vmem:[%s2702_s28 + $0x148] sm:$0xff] }
 0x229   : > { %2434 = verf.f32 %v1051_v9  ;;  %v2982_v42 = vmul.f32 %v1070_v34, %v1022_v30  ;;  %v1225_v9 = vld [vmem:[%s2702_s28 + $0x1d8] sm:$0xff]  ;;  %v1208_v30 = vld [vmem:[%s2702_s28 + $0x150] sm:$0xff] }
 0x22a   : > { %v2425_v28 = vpop.eup %2424  ;;  %v2980_v39 = vmul.f32 %v1071_v37, %v1023_v26  ;;  %v2264_v26 = vpack.c.bf16 %v1207_v33, %v1206_v32  ;;  %v2266_v27 = vpack.c.bf16 %v1225_v9, %v1224_v0 }
 0x22b   : > { %v2427_v41 = vpop.eup %2426  ;;  %v1074_v43 = vadd.f32 1.0, %v2425_v28  ;;  %v1209_v28 = vld [vmem:[%s2702_s28 + $0x158] sm:$0xff] }
 0x22c   : > { %v1075_v48 = vadd.f32 1.0, %v2427_v41  ;;  %1294 = vmatprep.mubr.f32.mxu0 %v2980_v39 }
 0x22d   : > { %1295 = vmatmul.mubr.f32.vlgmr.msra.gmra.mrb[4].mxu0 %v2982_v42  ;;  %v2992_v57 = vmul.f32 %v1074_v43, %v1026_v51  ;;  %v1226_v43 = vld [vmem:[%s2702_s28 + $0x1e0] sm:$0xff] }
 0x22e   : > { %v2429_v52 = vpop.eup %2428  ;;  %2249 = vmatpush3.bf16.msra.mxu0 %v2248_v40  ;;  %v2990_v53 = vmul.f32 %v1075_v48, %v1027_v47  ;;  %v2268_v47 = vpack.c.bf16 %v1209_v28, %v1208_v30  ;;  %v1210_v51 = vld [vmem:[%s2702_s28 + $0x160] sm:$0xff]  ;;  %v1123_v28 = vld [vmem:[%s3376_s3 + $0xa8] sm:$0xff] }
 0x22f   : > { %v2431_v55 = vpop.eup %2430  ;;  %v1078_v56 = vadd.f32 1.0, %v2429_v52  ;;  %2251 = vmatprep.subr.bf16.mxu0 %v2250_v44  ;;  %v1227_v44 = vld [vmem:[%s2702_s28 + $0x1e8] sm:$0xff]  ;;  %v1122_v30 = vld [vmem:[%s3376_s3 + $0xa0] sm:$0xff] }
 0x230   : > { %v1079_v63 = vadd.f32 1.0, %v2431_v55  ;;  %1299 = vmatprep.mubr.f32.mxu0 %v2990_v53  ;;  %v2270_v50 = vpack.c.bf16 %v1227_v44, %v1226_v43  ;;  %v1211_v52 = vld [vmem:[%s2702_s28 + $0x168] sm:$0xff] }
 0x231   : > { %1300 = vmatmul.mubr.f32.gmra.mrb[6].mxu0 %v2992_v57  ;;  %v3004_v12 = vmul.f32 %v1078_v56, %v1030_v4  ;;  %v1228_v56 = vld [vmem:[%s2702_s28 + $0x1f0] sm:$0xff]  ;;  %v1213_v4 = vld [vmem:[%s2702_s28 + $0x178] sm:$0xff] }
 0x232   : > { %v2433_v6 = vpop.eup %2432  ;;  %2253 = vmatpush3.bf16.msra.mxu0 %v2252_v54  ;;  %v3002_v7 = vmul.f32 %v1079_v63, %v1031_v61  ;;  %v2272_v61 = vpack.c.bf16 %v1211_v52, %v1210_v51  ;;  %v2276_v15 = vpack.c.bf16 %v1213_v4, %v1212_v3  ;;  %v1108_v4 = vld [vmem:[%s3376_s3 + $0x30] sm:$0xff] }
 0x233   : > { %v2435_v10 = vpop.eup %2434  ;;  %v1082_v11 = vadd.f32 1.0, %v2433_v6  ;;  %2255 = vmatprep.subr.bf16.mxu0 %v2254_v58  ;;  %v1229_v58 = vld [vmem:[%s2702_s28 + $0x1f8] sm:$0xff]  ;;  %s3327_s28 = scalar_lea.sflag [#allocation3], %s408_s23 }
 0x234   : > { %v1083_v17 = vadd.f32 1.0, %v2435_v10  ;;  %1304 = vmatprep.mubr.f32.mxu0 %v3002_v7  ;;  %v2274_v2 = vpack.c.bf16 %v1229_v58, %v1228_v56  ;;  %v1119_v10 = vld [vmem:[%s3376_s3 + $0x88] sm:$0xff]  ;;  %v1125_v56 = vld [vmem:[%s3376_s3 + $0xb8] sm:$0xff] }
 0x235   : > { %1305 = vmatmul.mubr.f32.gmra.mrb[8].mxu0 %v3004_v12  ;;  %v3021_v29 = vmul.f32 %v1082_v11, %v1034_v20  ;;  %v1103_v20 = vld [vmem:[%s3376_s3 + $0x8] sm:$0xff] }
 0x236   : > { %2257 = vmatpush3.bf16.msra.mxu0 %v2256_v8  ;;  %v3019_v22 = vmul.f32 %v1083_v17, %v1035_v16  ;;  %v1118_v8 = vld [vmem:[%s3376_s3 + $0x80] sm:$0xff]  ;;  %v2284_v0 = vpack.c.bf16 %v1103_v20, %v1102_v19  ;;  %v1129_v19 = vld [vmem:[%s3376_s3 + $0xd8] sm:$0xff] }
 0x237   : > { %v961_v25 = vpop.f32.mrb[8].mxu1  ;;  %2259 = vmatprep.subr.bf16.mxu0 %v2258_v13  ;;  %v2282_v18 = vpack.c.bf16 %v1119_v10, %v1118_v8  ;;  %v1126_v10 = vld [vmem:[%s3376_s3 + $0xc0] sm:$0xff] }
 0x238   : > { %v3026_v24 = vadd.f32 %v3010_v62, %v961_v25  ;;  %v963_v34 = vpop.f32.mrb[9].mxu1  ;;  %1309 = vmatprep.mubr.f32.mxu0 %v3019_v22  ;;  %v1120_v25 = vld [vmem:[%s3376_s3 + $0x90] sm:$0xff] }
 0x239   : > { %v1009_v35 = vadd.f32 %v3017_v21, %v963_v34  ;;  %1310 = vmatmul.mubr.f32.gmra.mrb[10].mxu0 %v3021_v29 }
 0x23a   : > { %v1040_v36 = vmul.f32 0.70710677, %v3026_v24  ;;  %2261 = vmatpush3.bf16.msra.mxu0 %v2260_v23  ;;  %v1024_v32 = vmul.f32 0.5, %v3026_v24  ;;  %v1105_v24 = vld [vmem:[%s3376_s3 + $0x18] sm:$0xff] }
 0x23b   : > { %v1041_v37 = vmul.f32 0.70710677, %v1009_v35  ;;  %v967_v38 = vpop.f32.mrb[10].mxu1  ;;  %2263 = vmatprep.subr.bf16.mxu0 %v2262_v31  ;;  %v1121_v31 = vld [vmem:[%s3376_s3 + $0x98] sm:$0xff] }
 0x23c   : > { %2436 = verf.f32 %v1040_v36  ;;  %v3037_v40 = vadd.f32 %v3010_v62, %v967_v38  ;;  %v969_v41 = vpop.f32.mrb[11].mxu1 }
 0x23d   : > { %2438 = verf.f32 %v1041_v37  ;;  %v1013_v45 = vadd.f32 %v3017_v21, %v969_v41  ;;  %v1104_v37 = vld [vmem:[%s3376_s3 + $0x10] sm:$0xff] }
 0x23e   : > { %v1044_v46 = vmul.f32 0.70710677, %v3037_v40  ;;  %2265 = vmatpush3.bf16.msra.mxu0 %v2264_v26  ;;  %v2286_v26 = vpack.c.bf16 %v1121_v31, %v1120_v25  ;;  %v1028_v41 = vmul.f32 0.5, %v3037_v40  ;;  %v1107_v40 = vld [vmem:[%s3376_s3 + $0x28] sm:$0xff]  ;;  %v1113_v25 = vld [vmem:[%s3376_s3 + $0x58] sm:$0xff]  ;;  %v1130_v31 = vld [vmem:[%s3376_s3 + $0xe0] sm:$0xff] }
 0x23f   : > { %v1045_v48 = vmul.f32 0.70710677, %v1013_v45  ;;  %v973_v49 = vpop.f32.mrb[12].mxu1  ;;  %2267 = vmatprep.subr.bf16.mxu0 %v2266_v27  ;;  %v1029_v38 = vmul.f32 0.5, %v1013_v45  ;;  %v2288_v45 = vpack.c.bf16 %v1105_v24, %v1104_v37 }
 0x240   : > { %2440 = verf.f32 %v1044_v46  ;;  %v3046_v54 = vadd.f32 %v3010_v62, %v973_v49  ;;  %v975_v55 = vpop.f32.mrb[13].mxu1  ;;  %v2290_v49 = vpack.c.bf16 %v1123_v28, %v1122_v30  ;;  %v1400_v28 = vld [vmem:[%s440_s25] sm:$0xff] }
 0x241   : > { %2442 = verf.f32 %v1045_v48  ;;  %v3051_v59 = vadd.f32 %v3017_v21, %v975_v55  ;;  %v1124_v55 = vld [vmem:[%s3376_s3 + $0xb0] sm:$0xff] }
 0x242   : > { %v1048_v60 = vmul.f32 0.70710677, %v3046_v54  ;;  %2269 = vmatpush3.bf16.msra.mxu0 %v2268_v47  ;;  %v1032_v58 = vmul.f32 0.5, %v3046_v54  ;;  %v2294_v3 = vpack.c.bf16 %v1125_v56, %v1124_v55  ;;  %v1109_v54 = vld [vmem:[%s3376_s3 + $0x38] sm:$0xff] }
 0x243   : > { %v1049_v63 = vmul.f32 0.70710677, %v3051_v59  ;;  %v979_v1 = vpop.f32.mrb[14].mxu1  ;;  %2271 = vmatprep.subr.bf16.mxu0 %v2270_v50  ;;  %v1106_v50 = vld [vmem:[%s3376_s3 + $0x20] sm:$0xff]  ;;  %v1033_v51 = vmul.f32 0.5, %v3051_v59 }
 0x244   : > { %2444 = verf.f32 %v1048_v60  ;;  %v3058_v5 = vadd.f32 %v3010_v62, %v979_v1  ;;  %v981_v6 = vpop.f32.mrb[15].mxu1  ;;  %v2292_v59 = vpack.c.bf16 %v1107_v40, %v1106_v50 }
 0x245   : > { %2446 = verf.f32 %v1049_v63  ;;  %v3067_v11 = vadd.f32 %v3017_v21, %v981_v6  ;;  %v1025_v21 = vmul.f32 0.5, %v1009_v35 }
 0x246   : > { %v2437_v13 = vpop.eup %2436  ;;  %v1052_v14 = vmul.f32 0.70710677, %v3058_v5  ;;  %2273 = vmatpush3.bf16.msra.mxu0 %v2272_v61 }
 0x247   : > { %v2439_v16 = vpop.eup %2438  ;;  %v1072_v17 = vadd.f32 1.0, %v2437_v13  ;;  %v1053_v62 = vmul.f32 0.70710677, %v3067_v11  ;;  %2275 = vmatprep.subr.bf16.mxu0 %v2274_v2  ;;  %v1037_v6 = vmul.f32 0.5, %v3067_v11  ;;  %v1127_v13 = vld [vmem:[%s3376_s3 + $0xc8] sm:$0xff] }
 0x248   : > { %v1073_v23 = vadd.f32 1.0, %v2439_v16  ;;  %2448 = verf.f32 %v1052_v14  ;;  %v1036_v14 = vmul.f32 0.5, %v3058_v5  ;;  %v2296_v16 = vpack.c.bf16 %v1109_v54, %v1108_v4  ;;  %v1128_v5 = vld [vmem:[%s3376_s3 + $0xd0] sm:$0xff]  ;;  %v1153_v54 = vld [vmem:[%s3376_s3 + $0x198] sm:$0xff] }
 0x249   : > { %2450 = verf.f32 %v1053_v62  ;;  %v3086_v35 = vmul.f32 %v1072_v17, %v1024_v32  ;;  %v2298_v17 = vpack.c.bf16 %v1127_v13, %v1126_v10  ;;  %v1110_v62 = vld [vmem:[%s3376_s3 + $0x40] sm:$0xff]  ;;  %v1131_v32 = vld [vmem:[%s3376_s3 + $0xe8] sm:$0xff]  ;;  %v1152_v4 = vld [vmem:[%s3376_s3 + $0x190] sm:$0xff] }
 0x24a   : > { %v2441_v33 = vpop.eup %2440  ;;  %2277 = vmatpush3.bf16.msra.mxu0 %v2276_v15  ;;  %v3084_v34 = vmul.f32 %v1073_v23, %v1025_v21  ;;  %v2302_v21 = vpack.c.bf16 %v1129_v19, %v1128_v5  ;;  %v1112_v23 = vld [vmem:[%s3376_s3 + $0x50] sm:$0xff]  ;;  %v1155_v5 = vld [vmem:[%s3376_s3 + $0x1a8] sm:$0xff] }
 0x24b   : > { %v2443_v9 = vpop.eup %2442  ;;  %v1076_v36 = vadd.f32 1.0, %v2441_v33  ;;  %2283 = vmatprep.subr.bf16.mxu0 %v2282_v18  ;;  %v1111_v18 = vld [vmem:[%s3376_s3 + $0x48] sm:$0xff]  ;;  %v2306_v33 = vpack.c.bf16 %v1131_v32, %v1130_v31  ;;  %v1138_v31 = vld [vmem:[%s3376_s3 + $0x120] sm:$0xff] }
 0x24c   : > { %v1077_v27 = vadd.f32 1.0, %v2443_v9  ;;  %1379 = vmatprep.mubr.f32.mxu0 %v3084_v34  ;;  %v2300_v20 = vpack.c.bf16 %v1111_v18, %v1110_v62  ;;  %v1115_v9 = vld [vmem:[%s3376_s3 + $0x68] sm:$0xff]  ;;  %v1154_v18 = vld [vmem:[%s3376_s3 + $0x1a0] sm:$0xff] }
 0x24d   : > { %1380 = vmatmul.mubr.f32.vlgmr.msra.gmra.mrb[12].mxu0 %v3086_v35  ;;  %v3105_v48 = vmul.f32 %v1076_v36, %v1028_v41  ;;  %v1132_v36 = vld [vmem:[%s3376_s3 + $0xf0] sm:$0xff]  ;;  %v1401_v41 = vld [vmem:[%s440_s25 + $0x8] sm:$0xff] }
 0x24e   : > { %v2445_v43 = vpop.eup %2444  ;;  %2285 = vmatpush3.bf16.msra.mxu0 %v2284_v0  ;;  %v3103_v44 = vmul.f32 %v1077_v27, %v1029_v38  ;;  %v1114_v0 = vld [vmem:[%s3376_s3 + $0x60] sm:$0xff]  ;;  %v1116_v38 = vld [vmem:[%s3376_s3 + $0x70] sm:$0xff]  ;;  %v1117_v27 = vld [vmem:[%s3376_s3 + $0x78] sm:$0xff] }
 0x24f   : > { %v2447_v46 = vpop.eup %2446  ;;  %v1080_v47 = vadd.f32 1.0, %v2445_v43  ;;  %2287 = vmatprep.subr.bf16.mxu0 %v2286_v26  ;;  %v1133_v26 = vld [vmem:[%s3376_s3 + $0xf8] sm:$0xff]  ;;  %v2308_v37 = vpack.c.bf16 %v1115_v9, %v1114_v0  ;;  %v2312_v30 = vpack.c.bf16 %v1117_v27, %v1116_v38  ;;  %v1139_v32 = vld [vmem:[%s3376_s3 + $0x128] sm:$0xff]  ;;  %v1158_v27 = vld [vmem:[%s3376_s3 + $0x1c0] sm:$0xff] }
 0x250   : > { %v1081_v52 = vadd.f32 1.0, %v2447_v46  ;;  %1384 = vmatprep.mubr.f32.mxu0 %v3103_v44  ;;  %v2310_v24 = vpack.c.bf16 %v1133_v26, %v1132_v36  ;;  %v1157_v0 = vld [vmem:[%s3376_s3 + $0x1b8] sm:$0xff]  ;;  %v2324_v36 = vpack.c.bf16 %v1139_v32, %v1138_v31 }
 0x251   : > { %1385 = vmatmul.mubr.f32.gmra.mrb[14].mxu0 %v3105_v48  ;;  %v3125_v2 = vmul.f32 %v1080_v47, %v1032_v58  ;;  %v1141_v38 = vld [vmem:[%s3376_s3 + $0x138] sm:$0xff] }
 0x252   : > { %v2449_v60 = vpop.eup %2448  ;;  %2289 = vmatpush3.bf16.msra.mxu0 %v2288_v45  ;;  %v3123_v61 = vmul.f32 %v1081_v52, %v1033_v51 }
 0x253   : > { %v2451_v63 = vpop.eup %2450  ;;  %v1084_v1 = vadd.f32 1.0, %v2449_v60  ;;  %2291 = vmatprep.subr.bf16.mxu0 %v2290_v49 }
 0x254   : > { %v1085_v8 = vadd.f32 1.0, %v2451_v63  ;;  %1389 = vmatprep.mubr.f32.mxu0 %v3123_v61  ;;  %v1134_v63 = vld [vmem:[%s3376_s3 + $0x100] sm:$0xff] }
 0x255   : > { %1390 = vmatmul.mubr.f32.gmra.mrb[16].mxu0 %v3125_v2  ;;  %v3145_v11 = vmul.f32 %v1084_v1, %v1036_v14  ;;  %v1135_v1 = vld [vmem:[%s3376_s3 + $0x108] sm:$0xff]  ;;  %v2318_v14 = vpack.c.bf16 %v1153_v54, %v1152_v4 }
 0x256   : > { %2293 = vmatpush3.bf16.msra.mxu0 %v2292_v59  ;;  %v3143_v15 = vmul.f32 %v1085_v8, %v1037_v6  ;;  %v2316_v8 = vpack.c.bf16 %v1135_v1, %v1134_v63 }
 0x257   : > { %2295 = vmatprep.subr.bf16.mxu0 %v2294_v3 }
 0x258   : > { %1394 = vmatprep.mubr.f32.mxu0 %v3143_v15 }
 0x259   : > { %1395 = vmatmul.mubr.f32.gmra.mrb[18].mxu0 %v3145_v11 }
 0x25a   : > { %2297 = vmatpush3.bf16.msra.mxu0 %v2296_v16  ;;  %1564 = vmatprep.mubr.f32.mxu0 %v2980_v39  ;;  %v2304_v39 = vpack.c.bf16 %v1113_v25, %v1112_v23  ;;  %v1136_v16 = vld [vmem:[%s3376_s3 + $0x110] sm:$0xff]  ;;  %v2322_v25 = vpack.c.bf16 %v1155_v5, %v1154_v18 }
 0x25b   : > { %2299 = vmatprep.subr.bf16.mxu0 %v2298_v17  ;;  %v1137_v17 = vld [vmem:[%s3376_s3 + $0x118] sm:$0xff] }
 0x25e   : > { %2301 = vmatpush3.bf16.msra.mxu0 %v2300_v20  ;;  %v2320_v20 = vpack.c.bf16 %v1137_v17, %v1136_v16 }
 0x25f   : > { %2303 = vmatprep.subr.bf16.mxu0 %v2302_v21 }
 0x262   : > { %2305 = vmatpush3.bf16.msra.mxu0 %v2304_v39 }
 0x263   : > { %2307 = vmatprep.subr.bf16.mxu0 %v2306_v33  ;;  %v1156_v33 = vld [vmem:[%s3376_s3 + $0x1b0] sm:$0xff] }
 0x266   : > { %2309 = vmatpush3.bf16.msra.mxu0 %v2308_v37  ;;  %v2326_v37 = vpack.c.bf16 %v1157_v0, %v1156_v33 }
 0x267   : > { %2311 = vmatprep.subr.bf16.mxu0 %v2310_v24  ;;  %v1140_v24 = vld [vmem:[%s3376_s3 + $0x130] sm:$0xff] }
 0x26a   : > { %2313 = vmatpush3.bf16.msra.mxu0 %v2312_v30  ;;  %v1159_v30 = vld [vmem:[%s3376_s3 + $0x1c8] sm:$0xff] }
 0x26d   : > { %1565 = vmatmul.mubr.f32.vlgmr.msra.gmra.mrb[20].mxu0 %v2982_v42  ;;  %v2278_v42 = vpack.c.bf16 %v1401_v41, %v1400_v28  ;;  %v2328_v28 = vpack.c.bf16 %v1141_v38, %v1140_v24  ;;  %v2330_v41 = vpack.c.bf16 %v1159_v30, %v1158_v27 }
 0x26e   : > { %1569 = vmatprep.mubr.f32.mxu0 %v2990_v53  ;;  %v1150_v53 = vld [vmem:[%s3376_s3 + $0x180] sm:$0xff] }
 0x26f   : > { %2279 = vmatprep.subr.bf16.mxu1 %v2278_v42 }
 0x270   : > { %2281 = vmatpush3.bf16.msra.mxu1 %v2278_v42  ;;  %v1142_v42 = vld [vmem:[%s3376_s3 + $0x140] sm:$0xff] }
 0x271   : > { %1570 = vmatmul.mubr.f32.gmra.mrb[22].mxu0 %v2992_v57  ;;  %v1151_v57 = vld [vmem:[%s3376_s3 + $0x188] sm:$0xff] }
 0x272   : > { %1574 = vmatprep.mubr.f32.mxu0 %v3002_v7  ;;  %v2314_v7 = vpack.c.bf16 %v1151_v57, %v1150_v53  ;;  %v1143_v53 = vld [vmem:[%s3376_s3 + $0x148] sm:$0xff]  ;;  %v1160_v57 = vld [vmem:[%s3376_s3 + $0x1d0] sm:$0xff] }
 0x274   : > { %2315 = vmatprep.subr.bf16.mxu1 %v2314_v7  ;;  %v1161_v7 = vld [vmem:[%s3376_s3 + $0x1d8] sm:$0xff] }
 0x275   : > { %1575 = vmatmul.mubr.f32.gmra.mrb[24].mxu0 %v3004_v12 }
 0x276   : > { %1579 = vmatprep.mubr.f32.mxu0 %v3019_v22 }
 0x279   : > { %1580 = vmatmul.mubr.f32.gmra.mrb[26].mxu0 %v3021_v29 }
 0x300   : > { %v1920_v12 = vpop.f32.mrb[4].mxu0 }
 0x301   : > { %v1921_v22 = vpop.f32.mrb[5].mxu0 }
 0x302   : > { %v1922_v29 = vadd.f32 %v1921_v22, %v1920_v12  ;;  %v2334_v12 = vpack.c.bf16 %v1161_v7, %v1160_v57  ;;  %v1144_v22 = vld [vmem:[%s3376_s3 + $0x150] sm:$0xff] }
 0x304   : > { %v1923_v43 = vpop.f32.mrb[6].mxu0 }
 0x305   : > { %v1924_v45 = vpop.f32.mrb[7].mxu0 }
 0x306   : > { %v1925_v46 = vadd.f32 %v1924_v45, %v1923_v43  ;;  %v1162_v43 = vld [vmem:[%s3376_s3 + $0x1e0] sm:$0xff]  ;;  %v1163_v45 = vld [vmem:[%s3376_s3 + $0x1e8] sm:$0xff] }
 0x308   : > { %v1926_v47 = vpop.f32.mrb[8].mxu0 }
 0x309   : > { %v1927_v49 = vpop.f32.mrb[9].mxu0 }
 0x30a   : > { %v1928_v50 = vadd.f32 %v1927_v49, %v1926_v47  ;;  %v2338_v47 = vpack.c.bf16 %v1163_v45, %v1162_v43  ;;  %v1146_v49 = vld [vmem:[%s3376_s3 + $0x160] sm:$0xff] }
 0x30c   : > { %v1929_v40 = vpop.f32.mrb[10].mxu0 }
 0x30d   : > { %v1930_v51 = vpop.f32.mrb[11].mxu0 }
 0x30e   : > { %v1931_v52 = vadd.f32 %v1930_v51, %v1929_v40  ;;  %v1164_v40 = vld [vmem:[%s3376_s3 + $0x1f0] sm:$0xff]  ;;  %v1165_v51 = vld [vmem:[%s3376_s3 + $0x1f8] sm:$0xff] }
 0x320   : > { %v1964_v55 = vpop.f32.mrb[12].mxu0 }
 0x321   : > { %v1965_v56 = vpop.f32.mrb[13].mxu0 }
 0x322   : > { %v1966_v58 = vadd.f32 %v1965_v56, %v1964_v55  ;;  %v2342_v56 = vpack.c.bf16 %v1165_v51, %v1164_v40 }
 0x324   : > { %v1382_v60 = vadd.f32 %v1966_v58, %v1922_v29  ;;  %v1967_v59 = vpop.f32.mrb[14].mxu0  ;;  %v1145_v29 = vld [vmem:[%s3376_s3 + $0x158] sm:$0xff]  ;;  %v1148_v58 = vld [vmem:[%s3376_s3 + $0x170] sm:$0xff] }
 0x325   : > { %v1968_v3 = vpop.f32.mrb[15].mxu0 }
 0x326   : > { %v1969_v6 = vadd.f32 %v1968_v3, %v1967_v59  ;;  %2112 = vmatprep.mubr.msk.f32.mxu1 %vm1402_vm1, %v1382_v60  ;;  %v1149_v60 = vld [vmem:[%s3376_s3 + $0x178] sm:$0xff] }
 0x327   : > { %v2344_v1 = vpack.c.bf16 %v1149_v60, %v1148_v58 }
 0x328   : > { %v1387_v10 = vadd.f32 %v1969_v6, %v1925_v46  ;;  %v1970_v13 = vpop.f32.mrb[16].mxu0  ;;  %v2336_v46 = vpack.c.bf16 %v1145_v29, %v1144_v22 }
 0x329   : > { %v1971_v62 = vpop.f32.mrb[17].mxu0 }
 0x32a   : > { %v1972_v19 = vadd.f32 %v1971_v62, %v1970_v13  ;;  %2113 = vmatmul.mubr.msk.f32.vlgmr.msra.gmra.mrb[16].mxu1 %vm1402_vm1, %v1387_v10 }
 0x32b   : > { %2317 = vmatpush3.bf16.msra.mxu1 %v2316_v8 }
 0x32c   : > { %v1392_v21 = vadd.f32 %v1972_v19, %v1928_v50  ;;  %v1973_v23 = vpop.f32.mrb[18].mxu0  ;;  %2319 = vmatprep.subr.bf16.mxu1 %v2318_v14  ;;  %v1147_v50 = vld [vmem:[%s3376_s3 + $0x168] sm:$0xff] }
 0x32d   : > { %v1974_v39 = vpop.f32.mrb[19].mxu0 }
 0x32e   : > { %v1975_v9 = vadd.f32 %v1974_v39, %v1973_v23  ;;  %2115 = vmatprep.mubr.msk.f32.mxu1 %vm1402_vm1, %v1392_v21 }
 0x32f   : > { %2321 = vmatpush3.bf16.msra.mxu1 %v2320_v20 }
 0x330   : > { %v1397_v26 = vadd.f32 %v1975_v9, %v1931_v52  ;;  %2323 = vmatprep.subr.bf16.mxu1 %v2322_v25  ;;  %v2340_v52 = vpack.c.bf16 %v1147_v50, %v1146_v49 }
 0x332   : > { %2116 = vmatmul.mubr.msk.f32.gmra.mrb[18].mxu1 %vm1402_vm1, %v1397_v26 }
 0x333   : > { %2325 = vmatpush3.bf16.msra.mxu1 %v2324_v36  ;;  %1649 = vmatprep.mubr.f32.mxu1 %v3084_v34  ;;  %v2332_v34 = vpack.c.bf16 %v1143_v53, %v1142_v42 }
 0x334   : > { %2327 = vmatprep.subr.bf16.mxu1 %v2326_v37 }
 0x337   : > { %2329 = vmatpush3.bf16.msra.mxu1 %v2328_v28 }
 0x338   : > { %2331 = vmatprep.subr.bf16.mxu1 %v2330_v41 }
 0x33b   : > { %2333 = vmatpush3.bf16.msra.mxu1 %v2332_v34 }
 0x33c   : > { %2335 = vmatprep.subr.bf16.mxu1 %v2334_v12 }
 0x33f   : > { %2337 = vmatpush3.bf16.msra.mxu1 %v2336_v46 }
 0x340   : > { %v2014_v55 = vpop.f32.mrb[20].mxu0  ;;  %2339 = vmatprep.subr.bf16.mxu1 %v2338_v47 }
 0x341   : > { %v2015_v59 = vpop.f32.mrb[21].mxu0 }
 0x342   : > { %v2016_v63 = vadd.f32 %v2015_v59, %v2014_v55 }
 0x343   : > { %2341 = vmatpush3.bf16.msra.mxu1 %v2340_v52 }
 0x344   : > { %v2017_v3 = vpop.f32.mrb[22].mxu0  ;;  %2343 = vmatprep.subr.bf16.mxu1 %v2342_v56 }
 0x345   : > { %v2018_v4 = vpop.f32.mrb[23].mxu0 }
 0x346   : > { %v2019_v54 = vadd.f32 %v2018_v4, %v2017_v3 }
 0x347   : > { %2345 = vmatpush3.bf16.msra.mxu1 %v2344_v1 }
 0x348   : > { %v2020_v6 = vpop.f32.mrb[24].mxu0 }
 0x349   : > { %v2021_v8 = vpop.f32.mrb[25].mxu0 }
 0x34a   : > { %v2022_v10 = vadd.f32 %v2021_v8, %v2020_v6  ;;  %1650 = vmatmul.mubr.f32.vlgmr.msra.gmra.mrb[20].mxu1 %v3086_v35 }
 0x34b   : > { %1654 = vmatprep.mubr.f32.mxu1 %v3103_v44 }
 0x34c   : > { %v2023_v13 = vpop.f32.mrb[26].mxu0 }
 0x34d   : > { %v2024_v14 = vpop.f32.mrb[27].mxu0 }
 0x34e   : > { %v2025_v16 = vadd.f32 %v2024_v14, %v2023_v13  ;;  %1655 = vmatmul.mubr.f32.gmra.mrb[22].mxu1 %v3105_v48 }
 0x34f   : > { %1659 = vmatprep.mubr.f32.mxu1 %v3123_v61 }
 0x352   : > { %1660 = vmatmul.mubr.f32.gmra.mrb[24].mxu1 %v3125_v2  ;;  %v1856_v2 = vld [vmem:[%s3377_s4] ss:$0 sm:$0xff] }
 0x353   : > { %1664 = vmatprep.mubr.f32.mxu1 %v3143_v15 }
 0x356   : > { %1665 = vmatmul.mubr.f32.gmra.mrb[26].mxu1 %v3145_v11 }
 0x3fd   : > { %v2114_v17 = vpop.f32.mrb[16].mxu1 }
 0x3fe   : > { %v1572_v62 = vadd.f32 %v2114_v17, %v2019_v54  ;;  %v1481_v35 = vpop.f32.mrb[17].mxu1 }
 0x3ff   : > { %v1567_v18 = vadd.f32 %v2016_v63, %v1481_v35 }
 0x405   : > { %v2117_v44 = vpop.f32.mrb[18].mxu1 }
 0x406   : > { %v1582_v5 = vadd.f32 %v2117_v44, %v2025_v16  ;;  %v1491_v19 = vpop.f32.mrb[19].mxu1 }
 0x407   : > { %v1577_v20 = vadd.f32 %v2022_v10, %v1491_v19 }
 0x41d   : > { %v2058_v21 = vpop.f32.mrb[20].mxu1 }
 0x41e   : > { %v2059_v48 = vpop.f32.mrb[21].mxu1 }
 0x41f   : > { %v2060_v61 = vadd.f32 %v2059_v48, %v2058_v21 }
 0x421   : > { %v1652_v15 = vadd.f32 %v2060_v61, %v1567_v18  ;;  %v2061_v11 = vpop.f32.mrb[22].mxu1 }
 0x422   : > { %v2062_v23 = vpop.f32.mrb[23].mxu1 }
 0x423   : > { %v1677_v25 = vadd.f32 %v1856_v2, %v1652_v15  ;;  %v2063_v31 = vadd.f32 %v2062_v23, %v2061_v11 }
 0x425   : > { %1681 = vst [vmem:[%s410_s18] sm:$0xff] %v1677_v25  ;;  %v1657_v32 = vadd.f32 %v2063_v31, %v1572_v62  ;;  %v2064_v39 = vpop.f32.mrb[24].mxu1 }
 0x426   : > { %v2065_v33 = vpop.f32.mrb[25].mxu1 }
 0x427   : > { %v1678_v0 = vadd.f32 %v1856_v2, %v1657_v32  ;;  %v2066_v9 = vadd.f32 %v2065_v33, %v2064_v39 }
 0x429   : > { %1682 = vst [vmem:[%s410_s18 + $0x8] sm:$0xff] %v1678_v0  ;;  %v1662_v36 = vadd.f32 %v2066_v9, %v1577_v20  ;;  %v2067_v26 = vpop.f32.mrb[26].mxu1 }
 0x42a   : > { %v2068_v37 = vpop.f32.mrb[27].mxu1 }
 0x42b   : > { %v1679_v24 = vadd.f32 %v1856_v2, %v1662_v36  ;;  %v2069_v38 = vadd.f32 %v2068_v37, %v2067_v26 }
 0x42d   : > { %1683 = vst [vmem:[%s410_s18 + $0x10] sm:$0xff] %v1679_v24  ;;  %v1667_v27 = vadd.f32 %v2069_v38, %v1582_v5 }
 0x42f   : > { %v1680_v30 = vadd.f32 %v1856_v2, %v1667_v27 }
 0x431   : > { %1684 = vst [vmem:[%s410_s18 + $0x18] sm:$0xff] %v1680_v30 }
 0x432   : > { %2465 = shalt.err (!%p2462_p5)
}
 0x433   : > { %s2466_s23 = scalar_lea.hbm %s3323_s26, 512  ;;  %s2470_s24 = scalar_lea.hbm %s3382_s9, 1024 }
 0x434   : > { %p2467_p6 = scmp.ne.s32.totalorder %s3323_s26, %s2466_s23  ;;  %p2471_p10 = scmp.lt.u32.totalorder %s3323_s26, %s3382_s9 }
 0x435   : > { %p2472_p11 = scmp.lt.u32.totalorder %s2470_s24, %s2466_s23  ;;  %p2474_p13 = scmp.lt.u32.totalorder %s2466_s23, %s3323_s26 }
 0x436   : > { %p2468_p7 = pnand %p2467_p6, %p2626_p4 }
 0x437   : > { %p2473_p12 = por %p2472_p11, %p2471_p10 }
 0x438   : > { %p2469_p9 = pneg %p2468_p7 }
 0x439   : > { %p2475_p0 = por %p2474_p13, %p2473_p12 }
 0x43b   : > { %p2476_p1 = pnand %p2475_p0, %p2469_p9 }
 0x43d   : > { %2479 = shalt.err (!%p2476_p1)
}
 0x43e   : > { %s2534_s27 = smov 128   ;;  %s2535_s12 = smov 8  }
 0x43f   : > { %2362 = dma.vmem_to_hbm [thread:$0]  (%p2626_p4), %s3318_s20, 512, %s3323_s26, %s3327_s28, %s2534_s27, %s2534_s27, %s2535_s12  }
 0x440 PF: > { %p2368_p2 = scmp.ge.s32.totalorder %s2530_s14, 2  ;;  %s1716_s29 = sand.u32 1, %s2510_s30  }
 0x441   : > { %s1717_s15 = scalar_lea.sflag [#allocation3], %s1716_s29 }
 0x442   : > { %p2365_p3 = pnand %p2368_p2, %p2633_p8 }
 0x444   : > { %2505 = dma.done.wait (!%p2365_p3), %s1717_s15, 512  }
 0x445   : > { %2507 = vsyncadd (!%p2365_p3), %s1717_s15, 4294966784  ;;  %s22_s14 = sadd.s32 1, %s2530_s14   ;;  %s3387_s30 = smov %s2514_s10 }
 0x446   : > { %p19_p5 = scmp.ge.s32.totalorder %s22_s14, 4   ;;  %s3388_s10 = smov %s2518_s11 }
 0x447   : > { %s3389_s11 = smov %s2639_s22  ;;  %s3390_s12 = smov %s2526_s13 }
 0x448   : > { %s3391_s13 = smov %s3393_s17  ;;  %21 = sbr.rel (!%p19_p5) target bundleno = 6 (0x6), region = 103 }
 0x44f   :  { %1722 = vsyncpa [#allocation3], 1 }
 0x450   :  { %1724 = vsyncpa [#allocation3 + $0x1], 1 }

</bundles_post_ra>
